<compile_context>
chip_gen: v7x
topology: tpu7x:2x2x1
jax: 0.10.0
libtpu: 0.0.40
codegen_flags: <defaults>
</compile_context>

<pallas_src>
import functools

import jax
import jax.numpy as jnp
from jax.experimental import pallas as pl
from jax.experimental.pallas import tpu as pltpu


TILE_V = 256  # multiple of 256 (v6e MXU width) and of 128 (v5e MXU width)


def _round_up(x, m):
    return (x + m - 1) // m * m


# --------------------------------------------------------------------------------------
# Kernel A: GRU cell + Luong dot attention + concat Linear + tanh
# --------------------------------------------------------------------------------------
def _gru_attn_concat_kernel(x_ref, h_ref, enc_ref,
                            wih_ref, whh_ref, bih_ref, bhh_ref,
                            wc1_ref, wc2_ref, bcat_ref,
                            hid_ref, cat_ref, *, hidden_pad, seq_len):
    Hp = hidden_pad
    bf16 = jnp.bfloat16

    x = x_ref[...]                       # (Bp, Hp) f32 (embedded token; dropout p=0)
    h = h_ref[...]                       # (Bp, Hp) f32 previous hidden
    enc = enc_ref[...]                   # (Bp, Lp, Hp) bf16 encoder outputs (batch-first)

    # ---- GRU cell (single layer, single step), PyTorch gate order r, z, n ----
    gi = jnp.dot(x.astype(bf16), wih_ref[...],
                 preferred_element_type=jnp.float32) + bih_ref[...]       # (Bp, 3Hp)
    gh = jnp.dot(h.astype(bf16), whh_ref[...],
                 preferred_element_type=jnp.float32) + bhh_ref[...]       # (Bp, 3Hp)

    r = jax.nn.sigmoid(gi[:, 0 * Hp:1 * Hp] + gh[:, 0 * Hp:1 * Hp])
    z = jax.nn.sigmoid(gi[:, 1 * Hp:2 * Hp] + gh[:, 1 * Hp:2 * Hp])
    n = jnp.tanh(gi[:, 2 * Hp:3 * Hp] + r * gh[:, 2 * Hp:3 * Hp])
    h_new = (1.0 - z) * n + z * h                                          # (Bp, Hp) f32

    # ---- Luong "dot" attention: MXU batched contractions (flash-attention style) ----
    hq = h_new.astype(bf16)[:, None, :]                                    # (Bp, 1, Hp)
    energy = jnp.einsum('bqh,bkh->bqk', hq, enc,
                        preferred_element_type=jnp.float32)                # (Bp, 1, Lp)

    # mask padded encoder positions
    lane = jax.lax.broadcasted_iota(jnp.int32, energy.shape, 2)
    energy = jnp.where(lane < seq_len, energy, -1e30)

    energy = energy - jnp.max(energy, axis=-1, keepdims=True)
    e = jnp.exp(energy)
    attn = e * pl.reciprocal(jnp.sum(e, axis=-1, keepdims=True), approx=True)  # (Bp,1,Lp)

    context = jnp.einsum('bqk,bkh->bqh', attn.astype(bf16), enc,
                         preferred_element_type=jnp.float32)[:, 0, :]      # (Bp, Hp) f32

    # ---- concat -> Linear(2H, H) -> tanh, with the concat folded into two matmuls ----
    cat = jnp.tanh(
        jnp.dot(h_new.astype(bf16), wc1_ref[...], preferred_element_type=jnp.float32)
        + jnp.dot(context.astype(bf16), wc2_ref[...], preferred_element_type=jnp.float32)
        + bcat_ref[...])                                                   # (Bp, Hp) f32

    hid_ref[...] = h_new
    cat_ref[...] = cat.astype(jnp.bfloat16)


# --------------------------------------------------------------------------------------
# Kernel B: vocab projection, tiled over V (parallel grid axis), bf16 weight streaming
# --------------------------------------------------------------------------------------
def _vocab_proj_kernel(cat_ref, wout_ref, bout_ref, logits_ref):
    logits_ref[...] = (
        jnp.dot(cat_ref[...], wout_ref[...], preferred_element_type=jnp.float32)
        + bout_ref[...])


# --------------------------------------------------------------------------------------
# Wrapper
# --------------------------------------------------------------------------------------
def luong_attn_decoder_step(input_voc, last_hidden, encoder_output, params):
    """input_voc: (1, B, H), last_hidden: (1, B, H), encoder_output: (L, B, H)."""
    x = input_voc[0]                  # (B, H)
    h0 = last_hidden[0]               # (B, H)
    L, B, H = encoder_output.shape
    V = params["w_out_t"].shape[1]

    f32, bf16 = jnp.float32, jnp.bfloat16
    Bp = max(8, _round_up(B, 8))
    Hp = _round_up(H, 128)
    Lp = _round_up(L, 128)
    Vp = _round_up(V, TILE_V)

    def pad2(a, rows, cols, dtype=f32):
        return jnp.pad(a, ((0, rows - a.shape[0]), (0, cols - a.shape[1]))).astype(dtype)

    xp = pad2(x, Bp, Hp)
    hp = pad2(h0, Bp, Hp)

    # Batch-first, padded, bf16 encoder output. (In production the encoder should emit
    # this layout directly; here the transpose fuses with the zero-padding pass.)
    enc = jnp.transpose(encoder_output, (1, 0, 2))
    enc = jnp.pad(enc, ((0, Bp - B), (0, Lp - L), (0, Hp - H))).astype(bf16)

    # GRU weights padded per gate so gate g occupies columns [g*Hp, g*Hp + H).
    def pad_gru_w(w):   # (H, 3H) -> (Hp, 3Hp) bf16
        return jnp.concatenate(
            [pad2(w[:, g * H:(g + 1) * H], Hp, Hp, bf16) for g in range(3)], axis=1)

    def pad_gru_b(b):   # (1, 3H) -> (1, 3Hp) f32
        return jnp.concatenate(
            [jnp.pad(b[:, g * H:(g + 1) * H], ((0, 0), (0, Hp - H))) for g in range(3)],
            axis=1)

    wih = pad_gru_w(params["w_ih_t"])
    whh = pad_gru_w(params["w_hh_t"])
    bih = pad_gru_b(params["b_ih"])
    bhh = pad_gru_b(params["b_hh"])

    wc = params["w_concat_t"]                   # (2H, H)
    wc1 = pad2(wc[:H], Hp, Hp, bf16)            # rnn_output half
    wc2 = pad2(wc[H:], Hp, Hp, bf16)            # context half
    bcat = jnp.pad(params["b_concat"], ((0, 0), (0, Hp - H)))

    wout = pad2(params["w_out_t"], Hp, Vp, bf16)
    bout = jnp.pad(params["b_out"], ((0, 0), (0, Vp - V)))

    vmem = pl.BlockSpec(memory_space=pltpu.MemorySpace.VMEM)
    kernel_a = functools.partial(_gru_attn_concat_kernel, hidden_pad=Hp, seq_len=L)

    h_new_p, cat_p = pl.pallas_call(
        kernel_a,
        out_shape=(jax.ShapeDtypeStruct((Bp, Hp), f32),
                   jax.ShapeDtypeStruct((Bp, Hp), bf16)),
        in_specs=[vmem] * 10,
        out_specs=(vmem, vmem),
    )(xp, hp, enc, wih, whh, bih, bhh, wc1, wc2, bcat)

    n_vt = Vp // TILE_V
    logits_p = pl.pallas_call(
        _vocab_proj_kernel,
        out_shape=jax.ShapeDtypeStruct((Bp, Vp), f32),
        grid=(n_vt,),
        in_specs=[pl.BlockSpec((Bp, Hp), lambda j: (0, 0)),
                  pl.BlockSpec((Hp, TILE_V), lambda j: (0, j)),
                  pl.BlockSpec((1, TILE_V), lambda j: (0, j))],
        out_specs=pl.BlockSpec((Bp, TILE_V), lambda j: (0, j)),
        compiler_params=pltpu.CompilerParams(dimension_semantics=("parallel",)),
    )(cat_p, wout, bout)

    # Final softmax over the real vocab (outside the V-tiled kernel so per-tile
    # normalization is never needed), exactly matching F.softmax(output, dim=1).
    logits = logits_p[:B, :V]
    out = jax.nn.softmax(logits, axis=1)
    hidden = h_new_p[:B, :H][None, :, :]        # (n_layers=1, B, H)
    return out, hidden


# --------------------------------------------------------------------------------------
# Params + pure-JAX reference
# --------------------------------------------------------------------------------------
def init_params(key, hidden_size, output_size):
    H, V = hidden_size, output_size
    ks = jax.random.split(key, 8)
    s = 1.0 / jnp.sqrt(H)
    # GRU weights stored pre-transposed: x @ w_ih_t == x @ W_ih^T  (PyTorch W_ih is (3H, H))
    w_ih_t = jax.random.uniform(ks[0], (H, 3 * H), jnp.float32, -s, s)
    w_hh_t = jax.random.uniform(ks[1], (H, 3 * H), jnp.float32, -s, s)
    b_ih = jax.random.uniform(ks[2], (1, 3 * H), jnp.float32, -s, s)
    b_hh = jax.random.uniform(ks[3], (1, 3 * H), jnp.float32, -s, s)
    w_concat_t = jax.random.uniform(ks[4], (2 * H, H), jnp.float32, -s, s)
    b_concat = jax.random.uniform(ks[5], (1, H), jnp.float32, -s, s)
    w_out_t = jax.random.uniform(ks[6], (H, V), jnp.float32, -s, s)
    b_out = jax.random.uniform(ks[7], (1, V), jnp.float32, -s, s)
    return dict(w_ih_t=w_ih_t, w_hh_t=w_hh_t, b_ih=b_ih, b_hh=b_hh,
                w_concat_t=w_concat_t, b_concat=b_concat,
                w_out_t=w_out_t, b_out=b_out)


def reference_step(input_voc, last_hidden, encoder_output, p):
    """Pure-JAX f32 reference mirroring the PyTorch forward (attn_model='dot')."""
    x = input_voc[0]
    h = last_hidden[0]
    H = x.shape[1]
    gi = x @ p["w_ih_t"] + p["b_ih"]
    gh = h @ p["w_hh_t"] + p["b_hh"]
    r = jax.nn.sigmoid(gi[:, :H] + gh[:, :H])
    z = jax.nn.sigmoid(gi[:, H:2 * H] + gh[:, H:2 * H])
    n = jnp.tanh(gi[:, 2 * H:] + r * gh[:, 2 * H:])
    h_new = (1.0 - z) * n + z * h                                    # (B, H)
    energy = jnp.sum(h_new[None, :, :] * encoder_output, axis=-1)    # (L, B)
    attn = jax.nn.softmax(energy.T, axis=1)[:, None, :]              # (B, 1, L)
    context = jnp.einsum("bol,blh->boh", attn,
                         jnp.transpose(encoder_output, (1, 0, 2)))[:, 0, :]
    concat_out = jnp.tanh(jnp.concatenate([h_new, context], axis=1) @ p["w_concat_t"]
                          + p["b_concat"])
    out = jax.nn.softmax(concat_out @ p["w_out_t"] + p["b_out"], axis=1)
    return out, h_new[None]


if __name__ == "__main__":
    B, H, L, V = 4, 32, 10, 500   # batch, hidden_size, encoder seq len, output_size (vocab)

    key = jax.random.PRNGKey(0)
    kp, k1, k2, k3 = jax.random.split(key, 4)
    params = init_params(kp, H, V)

    input_voc = jax.random.normal(k1, (1, B, H), jnp.float32)       # embedded decoder token
    last_hidden = jax.random.normal(k2, (1, B, H), jnp.float32)     # (n_layers=1, B, H)
    encoder_output = jax.random.normal(k3, (L, B, H), jnp.float32)  # (L, B, H)

    out, hidden = luong_attn_decoder_step(input_voc, last_hidden, encoder_output, params)
    jax.block_until_ready((out, hidden))

    ref_out, ref_hidden = reference_step(input_voc, last_hidden, encoder_output, params)
    assert out.shape == (B, V) and hidden.shape == (1, B, H)
    assert bool(jnp.allclose(jnp.sum(out, axis=1), 1.0, atol=1e-3))
    # bf16 weight streaming + approx reciprocal -> compare against the f32 reference
    # with bf16-level tolerances.
    assert bool(jnp.allclose(hidden, ref_hidden, atol=2e-2, rtol=2e-2))
    assert bool(jnp.allclose(out, ref_out, atol=3e-3, rtol=5e-2))

    # TODO(synk): only the 'dot' Attn score is implemented; 'general'/'concat' variants
    # would need their extra Linear weights added as additional kernel inputs.
    print("KERNEL_OK")
</pallas_src>

<mosaic_0001>
module attributes {stable_mosaic.version = 11 : i64} {
  func.func @_gru_attn_concat_kernel(%arg0: memref<8x128xf32, #tpu.memory_space<vmem>>, %arg1: memref<8x128xf32, #tpu.memory_space<vmem>>, %arg2: memref<8x128x128xbf16, #tpu.memory_space<vmem>>, %arg3: memref<128x384xbf16, #tpu.memory_space<vmem>>, %arg4: memref<128x384xbf16, #tpu.memory_space<vmem>>, %arg5: memref<1x384xf32, #tpu.memory_space<vmem>>, %arg6: memref<1x384xf32, #tpu.memory_space<vmem>>, %arg7: memref<128x128xbf16, #tpu.memory_space<vmem>>, %arg8: memref<128x128xbf16, #tpu.memory_space<vmem>>, %arg9: memref<1x128xf32, #tpu.memory_space<vmem>>, %arg10: memref<8x128xf32, #tpu.memory_space<vmem>>, %arg11: memref<8x128xbf16, #tpu.memory_space<vmem>>) attributes {dimension_semantics = [], scalar_prefetch = 0 : i64, scratch_operands = 0 : i64, tpu.core_type = #tpu.core_type<tc>} {
    %c0 = arith.constant 0 : index
    %c0_0 = arith.constant 0 : index
    %0 = vector.load %arg0[%c0, %c0_0] : memref<8x128xf32, #tpu.memory_space<vmem>>, vector<8x128xf32>
    %c0_1 = arith.constant 0 : index
    %c0_2 = arith.constant 0 : index
    %1 = vector.load %arg1[%c0_1, %c0_2] : memref<8x128xf32, #tpu.memory_space<vmem>>, vector<8x128xf32>
    %c0_3 = arith.constant 0 : index
    %c0_4 = arith.constant 0 : index
    %c0_5 = arith.constant 0 : index
    %2 = vector.load %arg2[%c0_3, %c0_4, %c0_5] : memref<8x128x128xbf16, #tpu.memory_space<vmem>>, vector<8x128x128xbf16>
    %3 = arith.truncf %0 : vector<8x128xf32> to vector<8x128xbf16>
    %c0_6 = arith.constant 0 : index
    %c0_7 = arith.constant 0 : index
    %4 = vector.load %arg3[%c0_6, %c0_7] : memref<128x384xbf16, #tpu.memory_space<vmem>>, vector<128x384xbf16>
    %cst = arith.constant dense<0.000000e+00> : vector<8x384xf32>
    %5 = tpu.matmul %3, %4, %cst {dimension_numbers = #tpu.dot_dimension_numbers<[1], [0], [0], [1], [0, 0, 1, 1], [], []>} : vector<8x128xbf16>, vector<128x384xbf16>, vector<8x384xf32> -> vector<8x384xf32>
    %c0_8 = arith.constant 0 : index
    %c0_9 = arith.constant 0 : index
    %6 = vector.load %arg5[%c0_8, %c0_9] : memref<1x384xf32, #tpu.memory_space<vmem>>, vector<1x384xf32>
    %7 = vector.broadcast %6 : vector<1x384xf32> to vector<8x384xf32>
    %8 = arith.addf %5, %7 : vector<8x384xf32>
    %9 = arith.truncf %1 : vector<8x128xf32> to vector<8x128xbf16>
    %c0_10 = arith.constant 0 : index
    %c0_11 = arith.constant 0 : index
    %10 = vector.load %arg4[%c0_10, %c0_11] : memref<128x384xbf16, #tpu.memory_space<vmem>>, vector<128x384xbf16>
    %cst_12 = arith.constant dense<0.000000e+00> : vector<8x384xf32>
    %11 = tpu.matmul %9, %10, %cst_12 {dimension_numbers = #tpu.dot_dimension_numbers<[1], [0], [0], [1], [0, 0, 1, 1], [], []>} : vector<8x128xbf16>, vector<128x384xbf16>, vector<8x384xf32> -> vector<8x384xf32>
    %c0_13 = arith.constant 0 : index
    %c0_14 = arith.constant 0 : index
    %12 = vector.load %arg6[%c0_13, %c0_14] : memref<1x384xf32, #tpu.memory_space<vmem>>, vector<1x384xf32>
    %13 = vector.broadcast %12 : vector<1x384xf32> to vector<8x384xf32>
    %14 = arith.addf %11, %13 : vector<8x384xf32>
    %15 = vector.extract_strided_slice %8 {offsets = [0, 0], sizes = [8, 128], strides = [1, 1]} : vector<8x384xf32> to vector<8x128xf32>
    %16 = vector.extract_strided_slice %14 {offsets = [0, 0], sizes = [8, 128], strides = [1, 1]} : vector<8x384xf32> to vector<8x128xf32>
    %17 = arith.addf %15, %16 : vector<8x128xf32>
    %18 = arith.negf %17 : vector<8x128xf32>
    %19 = math.exp %18 : vector<8x128xf32>
    %cst_15 = arith.constant 1.000000e+00 : f32
    %20 = vector.broadcast %cst_15 : f32 to vector<8x128xf32>
    %21 = arith.addf %20, %19 : vector<8x128xf32>
    %22 = arith.divf %20, %21 : vector<8x128xf32>
    %23 = vector.extract_strided_slice %8 {offsets = [0, 128], sizes = [8, 128], strides = [1, 1]} : vector<8x384xf32> to vector<8x128xf32>
    %24 = vector.extract_strided_slice %14 {offsets = [0, 128], sizes = [8, 128], strides = [1, 1]} : vector<8x384xf32> to vector<8x128xf32>
    %25 = arith.addf %23, %24 : vector<8x128xf32>
    %26 = arith.negf %25 : vector<8x128xf32>
    %27 = math.exp %26 : vector<8x128xf32>
    %cst_16 = arith.constant 1.000000e+00 : f32
    %28 = vector.broadcast %cst_16 : f32 to vector<8x128xf32>
    %29 = arith.addf %28, %27 : vector<8x128xf32>
    %30 = arith.divf %28, %29 : vector<8x128xf32>
    %31 = vector.extract_strided_slice %8 {offsets = [0, 256], sizes = [8, 128], strides = [1, 1]} : vector<8x384xf32> to vector<8x128xf32>
    %32 = vector.extract_strided_slice %14 {offsets = [0, 256], sizes = [8, 128], strides = [1, 1]} : vector<8x384xf32> to vector<8x128xf32>
    %33 = arith.mulf %22, %32 : vector<8x128xf32>
    %34 = arith.addf %31, %33 : vector<8x128xf32>
    %35 = math.tanh %34 : vector<8x128xf32>
    %cst_17 = arith.constant 1.000000e+00 : f32
    %36 = vector.broadcast %cst_17 : f32 to vector<8x128xf32>
    %37 = arith.subf %36, %30 : vector<8x128xf32>
    %38 = arith.mulf %37, %35 : vector<8x128xf32>
    %39 = arith.mulf %30, %1 : vector<8x128xf32>
    %40 = arith.addf %38, %39 : vector<8x128xf32>
    %41 = arith.truncf %40 : vector<8x128xf32> to vector<8x128xbf16>
    %42 = vector.shape_cast %41 : vector<8x128xbf16> to vector<8x1x128xbf16>
    "tpu.trace_start"() <{level = 10 : i32, message = "bqh,bkh->bqk"}> : () -> ()
    %cst_18 = arith.constant dense<0.000000e+00> : vector<8x1x128xf32>
    %43 = tpu.matmul %42, %2, %cst_18 {dimension_numbers = #tpu.dot_dimension_numbers<[2], [2], [1], [1], [0, 0, 0, 1, 1, 1], [0], [0]>} : vector<8x1x128xbf16>, vector<8x128x128xbf16>, vector<8x1x128xf32> -> vector<8x1x128xf32>
    "tpu.trace_stop"() : () -> ()
    %44 = tpu.iota {dimensions = array<i32: 2>} : vector<8x1x128xi32>
    %c10_i32 = arith.constant 10 : i32
    %45 = vector.broadcast %c10_i32 : i32 to vector<8x1x128xi32>
    %46 = arith.cmpi slt, %44, %45 : vector<8x1x128xi32>
    %cst_19 = arith.constant -1.000000e+30 : f32
    %47 = vector.broadcast %cst_19 : f32 to vector<8x1x128xf32>
    %48 = arith.select %46, %43, %47 : vector<8x1x128xi1>, vector<8x1x128xf32>
    %cst_20 = arith.constant dense<0xFF800000> : vector<8x1xf32>
    %49 = vector.multi_reduction <maximumf>, %48, %cst_20 [2] : vector<8x1x128xf32> to vector<8x1xf32>
    %50 = vector.shape_cast %49 : vector<8x1xf32> to vector<8x1x1xf32>
    %51 = vector.broadcast %50 : vector<8x1x1xf32> to vector<8x1x128xf32>
    %52 = arith.subf %48, %51 : vector<8x1x128xf32>
    %53 = math.exp %52 : vector<8x1x128xf32>
    %cst_21 = arith.constant dense<0.000000e+00> : vector<8x1xf32>
    %54 = vector.multi_reduction <add>, %53, %cst_21 [2] : vector<8x1x128xf32> to vector<8x1xf32>
    %55 = vector.shape_cast %54 : vector<8x1xf32> to vector<8x1x1xf32>
    %56 = tpu.reciprocal %55 {approx = true} : vector<8x1x1xf32> -> vector<8x1x1xf32>
    %57 = vector.broadcast %56 : vector<8x1x1xf32> to vector<8x1x128xf32>
    %58 = arith.mulf %53, %57 : vector<8x1x128xf32>
    %59 = arith.truncf %58 : vector<8x1x128xf32> to vector<8x1x128xbf16>
    "tpu.trace_start"() <{level = 10 : i32, message = "bqk,bkh->bqh"}> : () -> ()
    %cst_22 = arith.constant dense<0.000000e+00> : vector<8x1x128xf32>
    %60 = tpu.matmul %59, %2, %cst_22 {dimension_numbers = #tpu.dot_dimension_numbers<[2], [1], [1], [2], [0, 0, 0, 1, 1, 2], [0], [0]>} : vector<8x1x128xbf16>, vector<8x128x128xbf16>, vector<8x1x128xf32> -> vector<8x1x128xf32>
    "tpu.trace_stop"() : () -> ()
    %61 = vector.shape_cast %60 : vector<8x1x128xf32> to vector<8x128xf32>
    %62 = arith.truncf %40 : vector<8x128xf32> to vector<8x128xbf16>
    %c0_23 = arith.constant 0 : index
    %c0_24 = arith.constant 0 : index
    %63 = vector.load %arg7[%c0_23, %c0_24] : memref<128x128xbf16, #tpu.memory_space<vmem>>, vector<128x128xbf16>
    %cst_25 = arith.constant dense<0.000000e+00> : vector<8x128xf32>
    %64 = tpu.matmul %62, %63, %cst_25 {dimension_numbers = #tpu.dot_dimension_numbers<[1], [0], [0], [1], [0, 0, 1, 1], [], []>} : vector<8x128xbf16>, vector<128x128xbf16>, vector<8x128xf32> -> vector<8x128xf32>
    %65 = arith.truncf %61 : vector<8x128xf32> to vector<8x128xbf16>
    %c0_26 = arith.constant 0 : index
    %c0_27 = arith.constant 0 : index
    %66 = vector.load %arg8[%c0_26, %c0_27] : memref<128x128xbf16, #tpu.memory_space<vmem>>, vector<128x128xbf16>
    %cst_28 = arith.constant dense<0.000000e+00> : vector<8x128xf32>
    %67 = tpu.matmul %65, %66, %cst_28 {dimension_numbers = #tpu.dot_dimension_numbers<[1], [0], [0], [1], [0, 0, 1, 1], [], []>} : vector<8x128xbf16>, vector<128x128xbf16>, vector<8x128xf32> -> vector<8x128xf32>
    %68 = arith.addf %64, %67 : vector<8x128xf32>
    %c0_29 = arith.constant 0 : index
    %c0_30 = arith.constant 0 : index
    %69 = vector.load %arg9[%c0_29, %c0_30] : memref<1x128xf32, #tpu.memory_space<vmem>>, vector<1x128xf32>
    %70 = vector.broadcast %69 : vector<1x128xf32> to vector<8x128xf32>
    %71 = arith.addf %68, %70 : vector<8x128xf32>
    %72 = math.tanh %71 : vector<8x128xf32>
    %c0_31 = arith.constant 0 : index
    %c0_32 = arith.constant 0 : index
    %73 = vector.load %arg10[%c0_31, %c0_32] : memref<8x128xf32, #tpu.memory_space<vmem>>, vector<8x128xf32>
    tpu.vector_store %arg10[%c0_31, %c0_32], %40 {strides = array<i32>} : memref<8x128xf32, #tpu.memory_space<vmem>>, vector<8x128xf32>,
    %74 = arith.truncf %72 : vector<8x128xf32> to vector<8x128xbf16>
    %c0_33 = arith.constant 0 : index
    %c0_34 = arith.constant 0 : index
    %75 = vector.load %arg11[%c0_33, %c0_34] : memref<8x128xbf16, #tpu.memory_space<vmem>>, vector<8x128xbf16>
    tpu.vector_store %arg11[%c0_33, %c0_34], %74 {strides = array<i32>} : memref<8x128xbf16, #tpu.memory_space<vmem>>, vector<8x128xbf16>,
    return
  }
}

</mosaic_0001>

<bundles_post_ra>
// kernel: tpu_custom_call.1
= control target key start
LH: loop header
LB: loop body
LE: loop exit
PB: predicated region body
PF: predicated region fallthrough
CT: control target
= control target key end

     0   :  { %17 = vsyncpa [#allocation3], 0  ;;  %s4236_s0 = inlined_call_operand.hbm [shape: f32[8,128], index: 0, kind: input, shape index: {}]   ;;  %s4237_s1 = inlined_call_operand.hbm [shape: f32[8,128], index: 1, kind: input, shape index: {}]   ;;  %s4238_s2 = inlined_call_operand.hbm [shape: bf16[8,128,128], index: 2, kind: input, shape index: {}]   ;;  %s4239_s3 = inlined_call_operand.hbm [shape: bf16[128,384], index: 3, kind: input, shape index: {}]   ;;  %s4240_s4 = inlined_call_operand.hbm [shape: bf16[128,384], index: 4, kind: input, shape index: {}]   ;;  %s4241_s5 = inlined_call_operand.vmem [shape: f32[1,384], index: 5, kind: input, shape index: {}]   ;;  %s4242_s6 = inlined_call_operand.vmem [shape: f32[1,384], index: 6, kind: input, shape index: {}]   ;;  %s4243_s7 = inlined_call_operand.hbm [shape: bf16[128,128], index: 7, kind: input, shape index: {}]   ;;  %s4244_s8 = inlined_call_operand.hbm [shape: bf16[128,128], index: 8, kind: input, shape index: {}]   ;;  %s4245_s9 = inlined_call_operand.vmem [shape: f32[1,128], index: 9, kind: input, shape index: {}]   ;;  %s4246_s10 = inlined_call_operand.hbm [shape: f32[8,128], index: 10, kind: output, shape index: {0}]   ;;  %s4247_s11 = inlined_call_operand.hbm [shape: bf16[8,128], index: 11, kind: output, shape index: {1}]  }
   0x1   :  { %18 = vsyncpa [#allocation6], 0 }
   0x2   :  { %19 = vsyncpa [#allocation9], 0 }
   0x3   :  { %20 = vsyncpa [#allocation12], 0 }
   0x4   :  { %21 = vsyncpa [#allocation4], 0 }
   0x5   :  { %22 = vsyncpa [#allocation16], 0  ;;  %s3451_s17 = smov [#allocation5]   ;;  %s3452_s19 = smov [#allocation8]  }
   0x6   :  { %s39_s18 = sshll.u32 %s3451_s17, 4  ;;  %s60_s20 = sshll.u32 %s3452_s19, 4  ;;  %s40_s18 = int_to_ptr.vmem [resolvable:$true] %s39_s18  ;;  %s3528_s20 = int_to_ptr.vmem [resolvable:$true] %s60_s20 }
   0x7   :  { %s3241_s23 = scalar_lea.hbm %s4237_s1, 128 }
   0x8   :  { %p3242_p0 = scmp.ne.s32.totalorder %s4237_s1, %s3241_s23  ;;  %p3245_p1 = scmp.lt.u32.totalorder %s3241_s23, %s4237_s1 }
   0xa   :  { %p3247_p2 = pnand %p3245_p1, %p3242_p0 }
   0xc   :  { %3250 = shalt.err (!%p3247_p2)
}
   0xd   :  { %s3251_s28 = scalar_lea.vmem %s40_s18, 128  ;;  %p3256_p4 = scmp.lt.s32.totalorder %s40_s18, %s40_s18 }
   0xe   :  { %p3252_p3 = scmp.ne.s32.totalorder %s40_s18, %s3251_s28  ;;  %p3257_p5 = scmp.lt.s32.totalorder %s3251_s28, %s3251_s28 }
  0x10   :  { %p3258_p6 = por %p3257_p5, %p3256_p4 }
  0x12   :  { %p3259_p7 = pnand %p3258_p6, %p3252_p3 }
  0x14   :  { %3262 = shalt.err (!%p3259_p7)
}
  0x15   :  { %42 = dma.hbm_to_vmem [thread:$0]  %s4237_s1, 128, %s40_s18, [#allocation6]  }
  0x16   :  { %s3263_s14 = scalar_lea.hbm %s4239_s3, 3072 }
  0x17   :  { %p3264_p8 = scmp.ne.s32.totalorder %s4239_s3, %s3263_s14  ;;  %p3267_p9 = scmp.lt.u32.totalorder %s3263_s14, %s4239_s3 }
  0x19   :  { %p3269_p10 = pnand %p3267_p9, %p3264_p8 }
  0x1b   :  { %3272 = shalt.err (!%p3269_p10)
}
  0x1c   :  { %s3273_s21 = scalar_lea.vmem %s3528_s20, 3072  ;;  %p3278_p12 = scmp.lt.s32.totalorder %s3528_s20, %s3528_s20 }
  0x1d   :  { %p3274_p11 = scmp.ne.s32.totalorder %s3528_s20, %s3273_s21  ;;  %p3279_p13 = scmp.lt.s32.totalorder %s3273_s21, %s3273_s21 }
  0x1f   :  { %p3280_p0 = por %p3279_p13, %p3278_p12 }
  0x21   :  { %p3281_p1 = pnand %p3280_p0, %p3274_p11 }
  0x23   :  { %3284 = shalt.err (!%p3281_p1)
}
  0x24   :  { %s3453_s1 = smov 192   ;;  %s3454_s18 = smov 12  }
  0x25   :  { %66 = dma.hbm_to_vmem [thread:$0]  %s4239_s3, 3072, %s3528_s20, [#allocation9], %s3453_s1, %s3453_s1, %s3454_s18  }
  0x26   :  { %s3455_s24 = smov [#allocation11]   ;;  %s3456_s26 = smov [#allocation2]  }
  0x27   :  { %s88_s25 = sshll.u32 %s3455_s24, 4  ;;  %s29_s27 = sshll.u32 %s3456_s26, 4  ;;  %s89_s25 = int_to_ptr.vmem [resolvable:$true] %s88_s25  ;;  %s30_s27 = int_to_ptr.vmem [resolvable:$true] %s29_s27 }
  0x28   :  { %s3285_s30 = scalar_lea.hbm %s4243_s7, 1024 }
  0x29   :  { %p3286_p2 = scmp.ne.s32.totalorder %s4243_s7, %s3285_s30  ;;  %p3289_p3 = scmp.lt.u32.totalorder %s3285_s30, %s4243_s7 }
  0x2b   :  { %p3291_p4 = pnand %p3289_p3, %p3286_p2 }
  0x2d   :  { %3294 = shalt.err (!%p3291_p4)
}
  0x2e   :  { %s3295_s3 = scalar_lea.vmem %s89_s25, 1024  ;;  %p3300_p6 = scmp.lt.s32.totalorder %s89_s25, %s89_s25 }
  0x2f   :  { %p3296_p5 = scmp.ne.s32.totalorder %s89_s25, %s3295_s3  ;;  %p3301_p7 = scmp.lt.s32.totalorder %s3295_s3, %s3295_s3 }
  0x31   :  { %p3302_p8 = por %p3301_p7, %p3300_p6 }
  0x33   :  { %p3303_p9 = pnand %p3302_p8, %p3296_p5 }
  0x35   :  { %3306 = shalt.err (!%p3303_p9)
}
  0x36   :  { %s3457_s20 = smov 64   ;;  %s3458_s16 = smov 4  }
  0x37   :  { %94 = dma.hbm_to_vmem [thread:$0]  %s4243_s7, 1024, %s89_s25, [#allocation12], %s3457_s20, %s3457_s20, %s3458_s16  }
  0x38   :  { %s3307_s23 = scalar_lea.hbm %s4236_s0, 128 }
  0x39   :  { %p3308_p10 = scmp.ne.s32.totalorder %s4236_s0, %s3307_s23  ;;  %p3311_p11 = scmp.lt.u32.totalorder %s3307_s23, %s4236_s0 }
  0x3b   :  { %p3313_p12 = pnand %p3311_p11, %p3308_p10 }
  0x3d   :  { %3316 = shalt.err (!%p3313_p12)
}
  0x3e   :  { %s3317_s30 = scalar_lea.vmem %s30_s27, 128  ;;  %p3322_p0 = scmp.lt.s32.totalorder %s30_s27, %s30_s27 }
  0x3f   :  { %p3318_p13 = scmp.ne.s32.totalorder %s30_s27, %s3317_s30  ;;  %p3323_p1 = scmp.lt.s32.totalorder %s3317_s30, %s3317_s30 }
  0x41   :  { %p3324_p2 = por %p3323_p1, %p3322_p0 }
  0x43   :  { %p3325_p3 = pnand %p3324_p2, %p3318_p13 }
  0x45   :  { %3328 = shalt.err (!%p3325_p3)
}
  0x46   :  { %32 = dma.hbm_to_vmem [thread:$0]  %s4236_s0, 128, %s30_s27, [#allocation3]  }
  0x47   :  { %s3459_s12 = smov [#allocation7]   ;;  %s3460_s14 = smov [#allocation10]  }
  0x48   :  { %s48_s13 = sshll.u32 %s3459_s12, 4  ;;  %s72_s15 = sshll.u32 %s3460_s14, 4  ;;  %s49_s13 = int_to_ptr.vmem [resolvable:$true] %s48_s13  ;;  %s3589_s15 = int_to_ptr.vmem [resolvable:$true] %s72_s15 }
  0x49   :  { %s3329_s19 = scalar_lea.hbm %s4238_s2, 8192 }
  0x4a   :  { %p3330_p4 = scmp.ne.s32.totalorder %s4238_s2, %s3329_s19  ;;  %p3333_p5 = scmp.lt.u32.totalorder %s3329_s19, %s4238_s2 }
  0x4c   :  { %p3335_p6 = pnand %p3333_p5, %p3330_p4 }
  0x4e   :  { %3338 = shalt.err (!%p3335_p6)
}
  0x4f   :  { %s3339_s0 = scalar_lea.vmem %s49_s13, 8192  ;;  %p3344_p8 = scmp.lt.s32.totalorder %s49_s13, %s49_s13 }
  0x50   :  { %p3340_p7 = scmp.ne.s32.totalorder %s49_s13, %s3339_s0  ;;  %p3345_p9 = scmp.lt.s32.totalorder %s3339_s0, %s3339_s0 }
  0x52   :  { %p3346_p10 = por %p3345_p9, %p3344_p8 }
  0x54   :  { %p3347_p11 = pnand %p3346_p10, %p3340_p7 }
  0x56   :  { %3350 = shalt.err (!%p3347_p11)
}
  0x57   :  { %54 = dma.hbm_to_vmem [thread:$0]  %s4238_s2, 8192, %s49_s13, [#allocation6], %s3457_s20, %s3457_s20, %s3458_s16  }
  0x58   :  { %s3351_s30 = scalar_lea.hbm %s4240_s4, 3072 }
  0x59   :  { %p3352_p12 = scmp.ne.s32.totalorder %s4240_s4, %s3351_s30  ;;  %p3355_p13 = scmp.lt.u32.totalorder %s3351_s30, %s4240_s4 }
  0x5b   :  { %p3357_p0 = pnand %p3355_p13, %p3352_p12 }
  0x5d   :  { %3360 = shalt.err (!%p3357_p0)
}
  0x5e   :  { %s3361_s3 = scalar_lea.vmem %s3589_s15, 3072  ;;  %p3366_p2 = scmp.lt.s32.totalorder %s3589_s15, %s3589_s15 }
  0x5f   :  { %p3362_p1 = scmp.ne.s32.totalorder %s3589_s15, %s3361_s3  ;;  %p3367_p3 = scmp.lt.s32.totalorder %s3361_s3, %s3361_s3 }
  0x61   :  { %p3368_p4 = por %p3367_p3, %p3366_p2 }
  0x63   :  { %p3369_p5 = pnand %p3368_p4, %p3362_p1 }
  0x65   :  { %3372 = shalt.err (!%p3369_p5)
}
  0x66   :  { %78 = dma.hbm_to_vmem [thread:$0]  %s4240_s4, 3072, %s3589_s15, [#allocation9], %s3453_s1, %s3453_s1, %s3454_s18  }
  0x67   :  { %s3461_s17 = smov [#allocation13]   ;;  %s3373_s23 = scalar_lea.hbm %s4244_s8, 1024 }
  0x68   :  { %s100_s19 = sshll.u32 %s3461_s17, 4  ;;  %p3374_p6 = scmp.ne.s32.totalorder %s4244_s8, %s3373_s23  ;;  %s101_s19 = int_to_ptr.vmem [resolvable:$true] %s100_s19 }
  0x69   :  { %p3377_p7 = scmp.lt.u32.totalorder %s3373_s23, %s4244_s8 }
  0x6b   :  { %p3379_p8 = pnand %p3377_p7, %p3374_p6 }
  0x6d   :  { %3382 = shalt.err (!%p3379_p8)
}
  0x6e   :  { %s3383_s28 = scalar_lea.vmem %s101_s19, 1024  ;;  %p3388_p10 = scmp.lt.s32.totalorder %s101_s19, %s101_s19 }
  0x6f   :  { %p3384_p9 = scmp.ne.s32.totalorder %s101_s19, %s3383_s28  ;;  %p3389_p11 = scmp.lt.s32.totalorder %s3383_s28, %s3383_s28 }
  0x71   :  { %p3390_p12 = por %p3389_p11, %p3388_p10 }
  0x73   :  { %p3391_p13 = pnand %p3390_p12, %p3384_p9 }
  0x75   :  { %3394 = shalt.err (!%p3391_p13)
}
  0x76   :  { %106 = dma.hbm_to_vmem [thread:$0]  %s4244_s8, 1024, %s101_s19, [#allocation12], %s3457_s20, %s3457_s20, %s3458_s16  }
  0x77   :  { %3439 = dma.done.wait [#allocation3], 128  }
  0x78   :  { %3440 = vsyncadd [#allocation3], 4294967168 }
  0x79   :  { %3441 = dma.done.wait [#allocation6], 8320  }
  0x7a   :  { %3442 = vsyncadd [#allocation6], 4294958976 }
  0x7b   :  { %3443 = dma.done.wait [#allocation9], 6144  }
  0x7c   :  { %3444 = vsyncadd [#allocation9], 4294961152 }
  0x7d   :  { %3445 = dma.done.wait [#allocation12], 2048  }
  0x7e   :  { %3446 = vsyncadd [#allocation12], 4294965248  ;;  %v3462_v0 = vmov 0.0   ;;  %v3463_v1 = vmov 0   ;;  %vm3464_vm0 = vmmov 0   ;;  %v131_v23 = vld [vmem:[#allocation2] sm:$0xff] }
  0x7f   :  { %2628 = vmatprep.subr.bf16.mxu1 %v3462_v0  ;;  %471 = vmatprep.mubr.bf16.mxu0 %v3463_v1  ;;  %v3053_v2 = vld [vmem:[#allocation8 + $0x4] ss:$12 sps:$4 sm:$0xff]   ;;  %v3055_v3 = vld [vmem:[#allocation8] ss:$12 sps:$4 sm:$0xff]   ;;  %v3056_v4 = vld [vmem:[#allocation8 + $0x1c] ss:$12 sps:$4 sm:$0xff]   ;;  %v261_v26 = vpack.c.bf16 %v131_v23, %v131_v23 }
  0x80   :  { %2644 = vmatprep.mubr.msk.bf16.mxu1 %vm3464_vm0, %v3462_v0  ;;  %439 = vmatprep.subr.bf16.mxu0 %v3053_v2  ;;  %v3058_v5 = vld [vmem:[#allocation8 + $0x18] ss:$12 sps:$4 sm:$0xff]   ;;  %v3059_v6 = vld [vmem:[#allocation8 + $0x34] ss:$12 sps:$4 sm:$0xff]   ;;  %v3061_v7 = vld [vmem:[#allocation8 + $0x30] ss:$12 sps:$4 sm:$0xff]  }
  0x81   :  { %440 = vmatpush1.bf16.msra.mxu0 %v3055_v3  ;;  %v3062_v8 = vld [vmem:[#allocation8 + $0x4c] ss:$12 sps:$4 sm:$0xff]   ;;  %v3073_v9 = vld [vmem:[#allocation8 + $0x8] ss:$12 sps:$4 sm:$0xff]   ;;  %v3065_v11 = vld [vmem:[#allocation8 + $0x64] ss:$12 sps:$4 sm:$0xff]  }
  0x82   :  { %441 = vmatprep.subr.bf16.mxu0 %v3056_v4  ;;  %v3064_v10 = vld [vmem:[#allocation8 + $0x48] ss:$12 sps:$4 sm:$0xff]   ;;  %2629 = vmatpush3.bf16.msra.mxu1 %v3073_v9  ;;  %v3077_v12 = vld [vmem:[#allocation8 + $0x20] ss:$12 sps:$4 sm:$0xff]   ;;  %v3079_v14 = vld [vmem:[#allocation8 + $0x38] ss:$12 sps:$4 sm:$0xff]  }
  0x83   :  { %2630 = vmatprep.subr.bf16.mxu1 %v3462_v0  ;;  %v3067_v13 = vld [vmem:[#allocation8 + $0x60] ss:$12 sps:$4 sm:$0xff]   ;;  %v3068_v15 = vld [vmem:[#allocation8 + $0x7c] ss:$12 sps:$4 sm:$0xff]   ;;  %v3070_v16 = vld [vmem:[#allocation8 + $0x78] ss:$12 sps:$4 sm:$0xff]  }
  0x84   :  { %v3083_v17 = vld [vmem:[#allocation8 + $0x50] ss:$12 sps:$4 sm:$0xff]   ;;  %v3071_v18 = vld [vmem:[#allocation8 + $0x94] ss:$12 sps:$4 sm:$0xff]   ;;  %v3075_v21 = vld [vmem:[#allocation8 + $0xac] ss:$12 sps:$4 sm:$0xff]  }
  0x85   :  { %442 = vmatpush1.bf16.msra.mxu0 %v3058_v5  ;;  %v3074_v19 = vld [vmem:[#allocation8 + $0x90] ss:$12 sps:$4 sm:$0xff]   ;;  %v3087_v20 = vld [vmem:[#allocation8 + $0x68] ss:$12 sps:$4 sm:$0xff]   ;;  %v3091_v24 = vld [vmem:[#allocation8 + $0x80] ss:$12 sps:$4 sm:$0xff]  }
  0x86   :  { %443 = vmatprep.subr.bf16.mxu0 %v3059_v6  ;;  %2631 = vmatpush3.bf16.msra.mxu1 %v3077_v12  ;;  %v3078_v22 = vld [vmem:[#allocation8 + $0xa8] ss:$12 sps:$4 sm:$0xff]   ;;  %v3082_v25 = vld [vmem:[#allocation10 + $0x4] ss:$12 sps:$4 sm:$0xff]   ;;  %v3080_v27 = vld [vmem:[#allocation10] ss:$12 sps:$4 sm:$0xff]  }
  0x87   :  { %2632 = vmatprep.subr.bf16.mxu1 %v3462_v0  ;;  %v3095_v28 = vld [vmem:[#allocation8 + $0x98] ss:$12 sps:$4 sm:$0xff]   ;;  %v3086_v29 = vld [vmem:[#allocation10 + $0x1c] ss:$12 sps:$4 sm:$0xff]   ;;  %v3090_v32 = vld [vmem:[#allocation10 + $0x34] ss:$12 sps:$4 sm:$0xff]  }
  0x88   :  { %v3084_v30 = vld [vmem:[#allocation10 + $0x18] ss:$12 sps:$4 sm:$0xff]   ;;  %v3099_v31 = vld [vmem:[#allocation8 + $0xb0] ss:$12 sps:$4 sm:$0xff]   ;;  %v3106_v35 = vld [vmem:[#allocation10 + $0x8] ss:$12 sps:$4 sm:$0xff]  }
  0x89   :  { %444 = vmatpush1.bf16.msra.mxu0 %v3061_v7  ;;  %v3088_v33 = vld [vmem:[#allocation10 + $0x30] ss:$12 sps:$4 sm:$0xff]   ;;  %v3094_v34 = vld [vmem:[#allocation10 + $0x4c] ss:$12 sps:$4 sm:$0xff]   ;;  %v3092_v36 = vld [vmem:[#allocation10 + $0x48] ss:$12 sps:$4 sm:$0xff]  }
  0x8a   :  { %445 = vmatprep.subr.bf16.mxu0 %v3062_v8  ;;  %2633 = vmatpush3.bf16.msra.mxu1 %v3079_v14  ;;  %v3110_v37 = vld [vmem:[#allocation10 + $0x20] ss:$12 sps:$4 sm:$0xff]   ;;  %v3098_v38 = vld [vmem:[#allocation10 + $0x64] ss:$12 sps:$4 sm:$0xff]   ;;  %v3102_v41 = vld [vmem:[#allocation10 + $0x7c] ss:$12 sps:$4 sm:$0xff]  }
  0x8b   :  { %2634 = vmatprep.subr.bf16.mxu1 %v3462_v0  ;;  %v3096_v39 = vld [vmem:[#allocation10 + $0x60] ss:$12 sps:$4 sm:$0xff]   ;;  %v3111_v40 = vld [vmem:[#allocation10 + $0x38] ss:$12 sps:$4 sm:$0xff]   ;;  %v3112_v43 = vld [vmem:[#allocation10 + $0x50] ss:$12 sps:$4 sm:$0xff]  }
  0x8c   :  { %v3100_v42 = vld [vmem:[#allocation10 + $0x78] ss:$12 sps:$4 sm:$0xff]   ;;  %v3105_v44 = vld [vmem:[#allocation10 + $0x94] ss:$12 sps:$4 sm:$0xff]   ;;  %v3103_v45 = vld [vmem:[#allocation10 + $0x90] ss:$12 sps:$4 sm:$0xff]  }
  0x8d   :  { %446 = vmatpush1.bf16.msra.mxu0 %v3064_v10  ;;  %v3113_v46 = vld [vmem:[#allocation10 + $0x68] ss:$12 sps:$4 sm:$0xff]   ;;  %v3109_v47 = vld [vmem:[#allocation10 + $0xac] ss:$12 sps:$4 sm:$0xff]   ;;  %v3116_v53 = vld [vmem:[#allocation10 + $0xb0] ss:$12 sps:$4 sm:$0xff]  }
  0x8e   :  { %447 = vmatprep.subr.bf16.mxu0 %v3065_v11  ;;  %2635 = vmatpush3.bf16.msra.mxu1 %v3083_v17  ;;  %v3107_v48 = vld [vmem:[#allocation10 + $0xa8] ss:$12 sps:$4 sm:$0xff]   ;;  %v3660_v49 = vld [vmem:[#allocation5] sm:$0xff]  ;;  %v3114_v50 = vld [vmem:[#allocation10 + $0x80] ss:$12 sps:$4 sm:$0xff]   ;;  %v4248_v11 = vlaneseq  ;;  %vm1597_vm2 = vcmask 1040384  }
  0x8f   :  { %2636 = vmatprep.subr.bf16.mxu1 %v3462_v0  ;;  %v3115_v51 = vld [vmem:[#allocation10 + $0x98] ss:$12 sps:$4 sm:$0xff]   ;;  %v520_v52 = vpack.c.bf16 %v3660_v49, %v3660_v49  ;;  %v3681_v56 = vld [vmem:[#allocation7 + $0x8] sm:$0xff]   ;;  %v3689_v58 = vld [vmem:[#allocation7 + $0x10] sm:$0xff]   ;;  %vm2071_vm3 = vcmask 1041409   ;;  %vm2074_vm4 = vcmask 1042434  }
  0x90   :  { %v3673_v54 = vld [vmem:[#allocation7] sm:$0xff]   ;;  %v3684_v57 = vld [vmem:[#allocation7 + $0x48] sm:$0xff]   ;;  %v3692_v59 = vld [vmem:[#allocation7 + $0x50] sm:$0xff]   ;;  %v297_v12 = vshrl.u32 %v4248_v11, 7  ;;  %vm2077_vm5 = vcmask 1043459   ;;  %vm2080_vm6 = vcmask 1044484  }
  0x91   :  { %448 = vmatpush1.bf16.msra.mxu0 %v3067_v13  ;;  %v3675_v55 = vld [vmem:[#allocation7 + $0x40] sm:$0xff]   ;;  %v3697_v60 = vld [vmem:[#allocation7 + $0x18] sm:$0xff]   ;;  %v3716_v2 = vld [vmem:[#allocation7 + $0x68] sm:$0xff]   ;;  %vm2083_vm7 = vcmask 1045509   ;;  %vm2086_vm8 = vcmask 1046534   ;;  %vm2089_vm9 = vcmask 1047559  }
  0x92   :  { %449 = vmatprep.subr.bf16.mxu0 %v3068_v15  ;;  %2637 = vmatpush3.bf16.msra.mxu1 %v3087_v20  ;;  %v3700_v61 = vld [vmem:[#allocation7 + $0x58] sm:$0xff]   ;;  %v3705_v62 = vld [vmem:[#allocation7 + $0x20] sm:$0xff]   ;;  %v3721_v3 = vld [vmem:[#allocation7 + $0x30] sm:$0xff]   ;;  %v3738_v13 = vsub.s32 0, %v297_v12 }
  0x93   :  { %2638 = vmatprep.subr.bf16.mxu1 %v3462_v0  ;;  %v3708_v63 = vld [vmem:[#allocation7 + $0x60] sm:$0xff]   ;;  %v3724_v4 = vld [vmem:[#allocation7 + $0x70] sm:$0xff]   ;;  %v3729_v5 = vld [vmem:[#allocation7 + $0x38] sm:$0xff]  }
  0x94   :  { %v3731_v6 = vld [vmem:[#allocation7 + $0x78] sm:$0xff]   ;;  %v553_v14 = vld [vmem:[%s4242_s6] sm:$0x7]  ;;  %v3952_v11 = vld [vmem:[#allocation7 + $0x1e8] sm:$0xff]  }
  0x95   :  { %450 = vmatpush1.bf16.msra.mxu0 %v3070_v16  ;;  %v294_v15 = vld [vmem:[%s4241_s5] sm:$0x7]  ;;  %v302_v16 = vsub.s32 1, %v297_v12  ;;  %4264 = vst [vmem:[#allocation29_spill] sm:$0xff] %v3952_v11  ;;  %s3466_s5 = smov [#allocation14]  }
  0x96   :  { %451 = vmatprep.subr.bf16.mxu0 %v3071_v18  ;;  %2639 = vmatpush3.bf16.msra.mxu1 %v3091_v24  ;;  %v299_v17 = vrot.slane %v294_v15, %v3738_v13  ;;  %v558_v18 = vrot.slane %v553_v14, %v3738_v13  ;;  %s2287_s6 = sshll.u32 %s3466_s5, 4  ;;  %s2288_s6 = int_to_ptr.vmem [resolvable:$true] %s2287_s6 }
  0x97   :  { %2640 = vmatprep.subr.bf16.mxu1 %v3462_v0  ;;  %v562_v20 = vrot.slane %v553_v14, %v302_v16  ;;  %s3395_s15 = scalar_lea.vmem %s2288_s6, 128  ;;  %p3400_p1 = scmp.lt.s32.totalorder %s2288_s6, %s2288_s6 }
  0x98   :  { %p3396_p0 = scmp.ne.s32.totalorder %s2288_s6, %s3395_s15  ;;  %p3401_p2 = scmp.lt.s32.totalorder %s3395_s15, %s3395_s15 }
  0x99   :  { %452 = vmatpush1.bf16.msra.mxu0 %v3074_v19  ;;  %v303_v19 = vrot.slane %v294_v15, %v302_v16 }
  0x9a   :  { %453 = vmatprep.subr.bf16.mxu0 %v3075_v21  ;;  %2641 = vmatpush3.bf16.msra.mxu1 %v3095_v28  ;;  %v3028_v21 = vadd.f32 %v558_v18, %v299_v17  ;;  %p3402_p3 = por %p3401_p2, %p3400_p1 }
  0x9b   :  { %2642 = vmatprep.subr.bf16.mxu1 %v3462_v0  ;;  %v3030_v23 = vadd.f32 %v562_v20, %v303_v19  ;;  %v3757_v19 = vld [vmem:[#allocation7 + $0x80] sm:$0xff]  }
  0x9c   :  { %p3403_p4 = pnand %p3402_p3, %p3396_p0 }
  0x9d   :  { %454 = vmatpush1.bf16.msra.mxu0 %v3078_v22 }
  0x9e   :  { %698 = vmatprep.subr.bf16.mxu0 %v3082_v25  ;;  %2643 = vmatpush3.bf16.msra.mxu1 %v3099_v31 }
  0x9f   :  { %2648 = vmatprep.subr.bf16.mxu1 %v3462_v0 }
  0xa0   :  { %472 = vmatmul.mubr.bf16.vlgmr.msra.gmra.mrb[0].mxu0 %v261_v26 }
  0xa1   :  { %699 = vmatpush1.bf16.msra.mxu0 %v3080_v27  ;;  %730 = vmatprep.mubr.bf16.mxu0 %v3463_v1  ;;  %v3713_v1 = vld [vmem:[#allocation7 + $0x28] sm:$0xff]  }
  0xa2   :  { %700 = vmatprep.subr.bf16.mxu0 %v3086_v29  ;;  %2645 = vmatmul.mubr.bf16.vlgmr.msra.gmra.mrb[0].mxu1 %v261_v26 }
  0xa3   :  { %2649 = vmatpush3.bf16.msra.mxu1 %v3106_v35  ;;  %2664 = vmatprep.mubr.msk.bf16.mxu1 %vm3464_vm0, %v3462_v0 }
  0xa4   :  { %2650 = vmatprep.subr.bf16.mxu1 %v3462_v0 }
  0xa5   :  { %701 = vmatpush1.bf16.msra.mxu0 %v3084_v30 }
  0xa6   :  { %702 = vmatprep.subr.bf16.mxu0 %v3090_v32 }
  0xa7   :  { %2651 = vmatpush3.bf16.msra.mxu1 %v3110_v37  ;;  %v306_v37 = vsub.s32 2, %v297_v12 }
  0xa8   :  { %2652 = vmatprep.subr.bf16.mxu1 %v3462_v0 }
  0xa9   :  { %703 = vmatpush1.bf16.msra.mxu0 %v3088_v33 }
  0xaa   :  { %704 = vmatprep.subr.bf16.mxu0 %v3094_v34 }
  0xab   :  { %2653 = vmatpush3.bf16.msra.mxu1 %v3111_v40  ;;  %v307_v40 = vrot.slane %v294_v15, %v306_v37 }
  0xac   :  { %2654 = vmatprep.subr.bf16.mxu1 %v3462_v0 }
  0xad   :  { %705 = vmatpush1.bf16.msra.mxu0 %v3092_v36 }
  0xae   :  { %706 = vmatprep.subr.bf16.mxu0 %v3098_v38  ;;  %v566_v38 = vrot.slane %v553_v14, %v306_v37  ;;  %v3823_v37 = vld [vmem:[#allocation7 + $0xf8] sm:$0xff]  }
  0xaf   :  { %2655 = vmatpush3.bf16.msra.mxu1 %v3112_v43 }
  0xb0   :  { %2656 = vmatprep.subr.bf16.mxu1 %v3462_v0 }
  0xb1   :  { %707 = vmatpush1.bf16.msra.mxu0 %v3096_v39 }
  0xb2   :  { %708 = vmatprep.subr.bf16.mxu0 %v3102_v41 }
  0xb3   :  { %2657 = vmatpush3.bf16.msra.mxu1 %v3113_v46 }
  0xb4   :  { %2658 = vmatprep.subr.bf16.mxu1 %v3462_v0 }
  0xb5   :  { %709 = vmatpush1.bf16.msra.mxu0 %v3100_v42 }
  0xb6   :  { %710 = vmatprep.subr.bf16.mxu0 %v3105_v44 }
  0xb7   :  { %2659 = vmatpush3.bf16.msra.mxu1 %v3114_v50 }
  0xb8   :  { %2660 = vmatprep.subr.bf16.mxu1 %v3462_v0 }
  0xb9   :  { %711 = vmatpush1.bf16.msra.mxu0 %v3103_v45 }
  0xba   :  { %712 = vmatprep.subr.bf16.mxu0 %v3109_v47  ;;  %v3465_v47 = vmov 1966171168  }
  0xbb   :  { %2661 = vmatpush3.bf16.msra.mxu1 %v3115_v51 }
  0xbc   :  { %2662 = vmatprep.subr.bf16.mxu1 %v3462_v0 }
  0xbd   :  { %713 = vmatpush1.bf16.msra.mxu0 %v3107_v48  ;;  %v803_v48 = vunpack.c.l.s4 %v3465_v47  ;;  %v3854_v47 = vld [vmem:[#allocation7 + $0x110] sm:$0xff]  }
  0xbe   :  { %2668 = vmatprep.subr.bf16.mxu0 %v3462_v0 }
  0xbf   :  { %2663 = vmatpush3.bf16.msra.mxu1 %v3116_v53 }
  0xc0   :  { %731 = vmatmul.mubr.bf16.vlgmr.msra.gmra.mrb[0].mxu0 %v520_v52  ;;  %2688 = vmatprep.subr.bf16.mxu1 %v3462_v0 }
  0xc1   :  { %2684 = vmatprep.mubr.msk.bf16.mxu0 %vm3464_vm0, %v3462_v0 }
  0xc2   :  { %2665 = vmatmul.mubr.bf16.vlgmr.msra.gmra.mrb[4].mxu1 %v520_v52  ;;  %v804_v52 = vunpack.c.0.s8 %v803_v48  ;;  %v3856_v48 = vld [vmem:[#allocation7 + $0x150] sm:$0xff]  }
  0xc3   :  { %2704 = vmatprep.mubr.msk.bf16.mxu1 %vm3464_vm0, %v3462_v0 }
  0xc4   :  { %v807_v14 = vsub.s32 %v804_v52, %v297_v12  ;;  %v3870_v52 = vld [vmem:[#allocation7 + $0x120] sm:$0xff]  }
  0xc6   :  { %2669 = vmatpush3.bf16.xpose.msra.mxu0 %v3673_v54 }
  0xc7   :  { %2670 = vmatprep.subr.bf16.mxu0 %v3462_v0 }
  0xc8   :  { %2689 = vmatpush3.bf16.xpose.msra.mxu1 %v3675_v55 }
  0xc9   :  { %2690 = vmatprep.subr.bf16.mxu1 %v3462_v0 }
  0xce   :  { %2671 = vmatpush3.bf16.xpose.msra.mxu0 %v3681_v56 }
  0xcf   :  { %2672 = vmatprep.subr.bf16.mxu0 %v3462_v0 }
  0xd0   :  { %2691 = vmatpush3.bf16.xpose.msra.mxu1 %v3684_v57 }
  0xd1   :  { %2692 = vmatprep.subr.bf16.mxu1 %v3462_v0 }
  0xd6   :  { %2673 = vmatpush3.bf16.xpose.msra.mxu0 %v3689_v58 }
  0xd7   :  { %2674 = vmatprep.subr.bf16.mxu0 %v3462_v0 }
  0xd8   :  { %2693 = vmatpush3.bf16.xpose.msra.mxu1 %v3692_v59 }
  0xd9   :  { %2694 = vmatprep.subr.bf16.mxu1 %v3462_v0 }
  0xde   :  { %2675 = vmatpush3.bf16.xpose.msra.mxu0 %v3697_v60 }
  0xdf   :  { %2676 = vmatprep.subr.bf16.mxu0 %v3462_v0 }
  0xe0   :  { %2695 = vmatpush3.bf16.xpose.msra.mxu1 %v3700_v61 }
  0xe1   :  { %2696 = vmatprep.subr.bf16.mxu1 %v3462_v0 }
  0xe6   :  { %2677 = vmatpush3.bf16.xpose.msra.mxu0 %v3705_v62 }
  0xe7   :  { %2678 = vmatprep.subr.bf16.mxu0 %v3462_v0 }
  0xe8   :  { %2697 = vmatpush3.bf16.xpose.msra.mxu1 %v3708_v63 }
  0xe9   :  { %2698 = vmatprep.subr.bf16.mxu1 %v3462_v0 }
  0xee   :  { %2679 = vmatpush3.bf16.xpose.msra.mxu0 %v3713_v1 }
  0xef   :  { %2680 = vmatprep.subr.bf16.mxu0 %v3462_v0 }
  0xf0   :  { %2699 = vmatpush3.bf16.xpose.msra.mxu1 %v3716_v2 }
  0xf1   :  { %2700 = vmatprep.subr.bf16.mxu1 %v3462_v0 }
  0xf6   :  { %2681 = vmatpush3.bf16.xpose.msra.mxu0 %v3721_v3 }
  0xf7   :  { %2682 = vmatprep.subr.bf16.mxu0 %v3462_v0 }
  0xf8   :  { %2701 = vmatpush3.bf16.xpose.msra.mxu1 %v3724_v4 }
  0xf9   :  { %2702 = vmatprep.subr.bf16.mxu1 %v3462_v0 }
  0xfe   :  { %2683 = vmatpush3.bf16.xpose.msra.mxu0 %v3729_v5 }
  0xff   :  { %2708 = vmatprep.subr.bf16.mxu0 %v3462_v0 }
 0x100   :  { %2703 = vmatpush3.bf16.xpose.msra.mxu1 %v3731_v6 }
 0x101   :  { %2728 = vmatprep.subr.bf16.mxu1 %v3462_v0 }
 0x175   :  { %v514_v7 = vpop.f32.mrb[0].mxu1 }
 0x176   :  { %v2646_v8 = vpop.f32.mrb[1].mxu1  ;;  %v515_v44 = vadd.f32 %v514_v7, %v307_v40 }
 0x177   :  { %v517_v9 = vpop.f32.mrb[2].mxu1 }
 0x178   :  { %v2647_v10 = vpop.f32.mrb[3].mxu1 }
 0x193   :  { %v732_v22 = vpop.f32.mrb[0].mxu0 }
 0x194   :  { %v3029_v24 = vadd.f32 %v3028_v21, %v732_v22  ;;  %v734_v25 = vpop.f32.mrb[1].mxu0  ;;  %v3760_v21 = vld [vmem:[#allocation7 + $0xc0] sm:$0xff]   ;;  %v3771_v22 = vld [vmem:[#allocation7 + $0x88] sm:$0xff]  }
 0x195   :  { %v736_v26 = vpop.f32.mrb[2].mxu0  ;;  %v3031_v29 = vadd.f32 %v3030_v23, %v734_v25  ;;  %v773_v31 = vpop.f32.mrb[4].mxu1  ;;  %v3773_v23 = vld [vmem:[#allocation7 + $0xc8] sm:$0xff]   ;;  %v3781_v25 = vld [vmem:[#allocation7 + $0xd0] sm:$0xff]  }
 0x196   :  { %v2361_v27 = vmul.f32 -1.442695, %v3029_v24  ;;  %v737_v28 = vpop.f32.mrb[3].mxu0  ;;  %v2666_v32 = vpop.f32.mrb[5].mxu1  ;;  %v774_v42 = vadd.f32 %v773_v31, %v566_v38  ;;  %v3779_v24 = vld [vmem:[#allocation7 + $0x90] sm:$0xff]   ;;  %v3787_v26 = vld [vmem:[#allocation7 + $0x98] sm:$0xff]  }
 0x197   :  { %v2362_v30 = vmul.f32 -1.442695, %v3031_v29  ;;  %v776_v33 = vpop.f32.mrb[6].mxu1  ;;  %v3795_v28 = vld [vmem:[#allocation7 + $0xa0] sm:$0xff]   ;;  %v3805_v31 = vld [vmem:[#allocation7 + $0xe8] sm:$0xff]   ;;  %v3811_v32 = vld [vmem:[#allocation7 + $0xb0] sm:$0xff]  }
 0x198   :  { %3197 = vpow2.f32 %v2361_v27  ;;  %v2667_v34 = vpop.f32.mrb[7].mxu1  ;;  %v3789_v27 = vld [vmem:[#allocation7 + $0xd8] sm:$0xff]   ;;  %v3797_v29 = vld [vmem:[#allocation7 + $0xe0] sm:$0xff]   ;;  %v3813_v33 = vld [vmem:[#allocation7 + $0xf0] sm:$0xff]  }
 0x199   :  { %3199 = vpow2.f32 %v2362_v30  ;;  %v3803_v30 = vld [vmem:[#allocation7 + $0xa8] sm:$0xff]  }
 0x1a2   :  { %v3198_v35 = vpop.eup %3197 }
 0x1a3   :  { %v783_v36 = vadd.f32 1.0, %v3198_v35  ;;  %v3200_v39 = vpop.eup %3199 }
 0x1a4   :  { %v790_v41 = vadd.f32 1.0, %v3200_v39 }
 0x1a5   :  { %3201 = vrcp.f32 %v783_v36  ;;  %v3821_v36 = vld [vmem:[#allocation7 + $0xb8] sm:$0xff]  }
 0x1a6   :  { %3203 = vrcp.f32 %v790_v41  ;;  %v3832_v41 = vld [vmem:[#allocation7 + $0x100] sm:$0xff]  }
 0x1af   :  { %v3202_v43 = vpop.eup %3201 }
 0x1b0   :  { %v793_v45 = vmul.f32 %v3202_v43, %v774_v42  ;;  %v3204_v50 = vpop.eup %3203  ;;  %v3835_v43 = vld [vmem:[#allocation7 + $0x140] sm:$0xff]  }
 0x1b1   :  { %v796_v51 = vsub.f32 1.0, %v3204_v50  ;;  %v798_v8 = vmul.f32 %v3204_v50, %v3660_v49  ;;  %v3862_v50 = vld [vmem:[#allocation7 + $0x118] sm:$0xff]  }
 0x1b2   :  { %v794_v46 = vadd.f32 %v793_v45, %v515_v44  ;;  %v3846_v45 = vld [vmem:[#allocation7 + $0x108] sm:$0xff]  }
 0x1b4   :  { %3205 = vtanh.f32 %v794_v46  ;;  %v3848_v46 = vld [vmem:[#allocation7 + $0x148] sm:$0xff]  }
 0x1be   :  { %v3206_v53 = vpop.eup %3205 }
 0x1bf   :  { %v797_v9 = vmul.f32 %v3206_v53, %v796_v51  ;;  %v3864_v51 = vld [vmem:[#allocation7 + $0x158] sm:$0xff]   ;;  %v3872_v53 = vld [vmem:[#allocation7 + $0x160] sm:$0xff]  }
 0x1c1   :  { %v799_v10 = vadd.f32 %v798_v8, %v797_v9  ;;  %v3878_v8 = vld [vmem:[#allocation7 + $0x128] sm:$0xff]  }
 0x1c2   :  { %v3880_v9 = vld [vmem:[#allocation7 + $0x168] sm:$0xff]  }
 0x1c3   :  { %2278 = vst [vmem:[#allocation14] sm:$0xff] %v799_v10  ;;  %v3749_v15 = vpack.c.bf16 %v799_v10, %v799_v10  ;;  %v3886_v10 = vld [vmem:[#allocation7 + $0x130] sm:$0xff]  }
 0x1c5   :  { %4258 = vst [vmem:[#allocation23_spill] sm:$0xff] %v3749_v15  ;;  %v808_v7 = vrot.slane %v3749_v15, %v807_v14  ;;  %v3958_v15 = vld [vmem:[#allocation7 + $0x1b0] sm:$0xff]  }
 0x1c6   :  { %4265 = vst [vmem:[#allocation30_spill] sm:$0xff] %v3958_v15 }
 0x1c7   :  { %v3752_v16 = vrot.slane %v808_v7, %v807_v14  ;;  %v809_v34 = vcombine.high %v808_v7, %v808_v7 }
 0x1c9   :  { %v2363_v17 = vpack.i.b16 %v3752_v16, %v3752_v16  ;;  %v827_v18 = vunpack.i.h.s16 %v3752_v16  ;;  %v3819_v35 = vrot.slane %v809_v34, %v807_v14  ;;  %v3888_v14 = vld [vmem:[#allocation7 + $0x170] sm:$0xff]   ;;  %v824_v7 = vcombine.high %v3752_v16, %v3752_v16  ;;  %v3904_v34 = vld [vmem:[#allocation7 + $0x180] sm:$0xff]  }
 0x1ca   :  { %v3907_v16 = vld [vmem:[#allocation7 + $0x1c0] sm:$0xff]  }
 0x1cb   :  { %v838_v20 = vrot.slane %v2363_v17, %v3738_v13  ;;  %v928_v49 = vpack.i.b16 %v827_v18, %v827_v18  ;;  %v829_v38 = vunpack.i.h.s16 %v3819_v35  ;;  %v2380_v39 = vpack.i.b16 %v3819_v35, %v3819_v35  ;;  %v3896_v17 = vld [vmem:[#allocation7 + $0x138] sm:$0xff]  }
 0x1cc   :  { %v3898_v18 = vld [vmem:[#allocation7 + $0x178] sm:$0xff]  }
 0x1cd   :  { %2685 = vmatmul.mubr.bf16.vlgmr.msra.gmra.mrb[4].mxu0 %v838_v20  ;;  %v932_v12 = vrot.slane %v928_v49, %v3738_v13  ;;  %v1116_v40 = vpack.i.b16 %v829_v38, %v829_v38  ;;  %v1026_v42 = vrot.slane %v2380_v39, %v3738_v13  ;;  %v831_v20 = vunpack.i.h.s16 %v824_v7 }
 0x1ce   :  { %2709 = vmatpush3.bf16.xpose.msra.mxu0 %v3757_v19  ;;  %2724 = vmatprep.mubr.msk.bf16.mxu0 %vm3464_vm0, %v3462_v0  ;;  %v2397_v49 = vpack.i.b16 %v824_v7, %v824_v7  ;;  %v3928_v7 = vld [vmem:[#allocation7 + $0x1d0] sm:$0xff]  }
 0x1cf   :  { %2705 = vmatmul.mubr.bf16.vlgmr.msra.gmra.mrb[8].mxu1 %v932_v12  ;;  %2710 = vmatprep.subr.bf16.mxu0 %v3462_v0  ;;  %v1120_v44 = vrot.slane %v1116_v40, %v3738_v13  ;;  %v1304_v12 = vpack.i.b16 %v831_v20, %v831_v20  ;;  %v3918_v40 = vld [vmem:[#allocation7 + $0x188] sm:$0xff]   ;;  %v3934_v20 = vld [vmem:[#allocation7 + $0x198] sm:$0xff]  }
 0x1d0   :  { %2729 = vmatpush3.bf16.xpose.msra.mxu1 %v3760_v21  ;;  %2744 = vmatprep.mubr.msk.bf16.mxu1 %vm3464_vm0, %v3462_v0  ;;  %v1214_v38 = vrot.slane %v2397_v49, %v3738_v13  ;;  %4259 = vst [vmem:[#allocation24_spill] sm:$0xff] %v3934_v20  ;;  %v3936_v49 = vld [vmem:[#allocation7 + $0x1d8] sm:$0xff]  }
 0x1d1   :  { %2730 = vmatprep.subr.bf16.mxu1 %v3462_v0  ;;  %v1308_v39 = vrot.slane %v1304_v12, %v3738_v13  ;;  %4260 = vst [vmem:[#allocation25_spill] sm:$0xff] %v3936_v49  ;;  %v3942_v12 = vld [vmem:[#allocation7 + $0x1a0] sm:$0xff]  }
 0x1d2   :  { %4261 = vst [vmem:[#allocation26_spill] sm:$0xff] %v3942_v12 }
 0x1d6   :  { %2711 = vmatpush3.bf16.xpose.msra.mxu0 %v3771_v22 }
 0x1d7   :  { %2712 = vmatprep.subr.bf16.mxu0 %v3462_v0 }
 0x1d8   :  { %2731 = vmatpush3.bf16.xpose.msra.mxu1 %v3773_v23 }
 0x1d9   :  { %2732 = vmatprep.subr.bf16.mxu1 %v3462_v0 }
 0x1de   :  { %2713 = vmatpush3.bf16.xpose.msra.mxu0 %v3779_v24 }
 0x1df   :  { %2714 = vmatprep.subr.bf16.mxu0 %v3462_v0 }
 0x1e0   :  { %2733 = vmatpush3.bf16.xpose.msra.mxu1 %v3781_v25 }
 0x1e1   :  { %2734 = vmatprep.subr.bf16.mxu1 %v3462_v0 }
 0x1e6   :  { %2715 = vmatpush3.bf16.xpose.msra.mxu0 %v3787_v26 }
 0x1e7   :  { %2716 = vmatprep.subr.bf16.mxu0 %v3462_v0 }
 0x1e8   :  { %2735 = vmatpush3.bf16.xpose.msra.mxu1 %v3789_v27 }
 0x1e9   :  { %2736 = vmatprep.subr.bf16.mxu1 %v3462_v0 }
 0x1ee   :  { %2717 = vmatpush3.bf16.xpose.msra.mxu0 %v3795_v28 }
 0x1ef   :  { %2718 = vmatprep.subr.bf16.mxu0 %v3462_v0 }
 0x1f0   :  { %2737 = vmatpush3.bf16.xpose.msra.mxu1 %v3797_v29 }
 0x1f1   :  { %2738 = vmatprep.subr.bf16.mxu1 %v3462_v0 }
 0x1f6   :  { %2719 = vmatpush3.bf16.xpose.msra.mxu0 %v3803_v30 }
 0x1f7   :  { %2720 = vmatprep.subr.bf16.mxu0 %v3462_v0 }
 0x1f8   :  { %2739 = vmatpush3.bf16.xpose.msra.mxu1 %v3805_v31 }
 0x1f9   :  { %2740 = vmatprep.subr.bf16.mxu1 %v3462_v0 }
 0x1fe   :  { %2721 = vmatpush3.bf16.xpose.msra.mxu0 %v3811_v32 }
 0x1ff   :  { %2722 = vmatprep.subr.bf16.mxu0 %v3462_v0 }
 0x200   :  { %2741 = vmatpush3.bf16.xpose.msra.mxu1 %v3813_v33 }
 0x201   :  { %2742 = vmatprep.subr.bf16.mxu1 %v3462_v0 }
 0x206   :  { %2723 = vmatpush3.bf16.xpose.msra.mxu0 %v3821_v36 }
 0x207   :  { %2748 = vmatprep.subr.bf16.mxu0 %v3462_v0 }
 0x208   :  { %2743 = vmatpush3.bf16.xpose.msra.mxu1 %v3823_v37 }
 0x209   :  { %2768 = vmatprep.subr.bf16.mxu1 %v3462_v0 }
 0x20d   :  { %2725 = vmatmul.mubr.bf16.vlgmr.msra.gmra.mrb[8].mxu0 %v1026_v42  ;;  %v3920_v42 = vld [vmem:[#allocation7 + $0x1c8] sm:$0xff]  }
 0x20e   :  { %2749 = vmatpush3.bf16.xpose.msra.mxu0 %v3832_v41  ;;  %2764 = vmatprep.mubr.msk.bf16.mxu0 %vm3464_vm0, %v3462_v0 }
 0x20f   :  { %2745 = vmatmul.mubr.bf16.vlgmr.msra.gmra.mrb[12].mxu1 %v1120_v44  ;;  %2750 = vmatprep.subr.bf16.mxu0 %v3462_v0  ;;  %v3926_v44 = vld [vmem:[#allocation7 + $0x190] sm:$0xff]  }
 0x210   :  { %2769 = vmatpush3.bf16.xpose.msra.mxu1 %v3835_v43  ;;  %2784 = vmatprep.mubr.msk.bf16.mxu1 %vm3464_vm0, %v3462_v0 }
 0x211   :  { %2770 = vmatprep.subr.bf16.mxu1 %v3462_v0 }
 0x216   :  { %2751 = vmatpush3.bf16.xpose.msra.mxu0 %v3846_v45 }
 0x217   :  { %2752 = vmatprep.subr.bf16.mxu0 %v3462_v0 }
 0x218   :  { %2771 = vmatpush3.bf16.xpose.msra.mxu1 %v3848_v46 }
 0x219   :  { %2772 = vmatprep.subr.bf16.mxu1 %v3462_v0 }
 0x21e   :  { %2753 = vmatpush3.bf16.xpose.msra.mxu0 %v3854_v47 }
 0x21f   :  { %2754 = vmatprep.subr.bf16.mxu0 %v3462_v0 }
 0x220   :  { %2773 = vmatpush3.bf16.xpose.msra.mxu1 %v3856_v48 }
 0x221   :  { %2774 = vmatprep.subr.bf16.mxu1 %v3462_v0 }
 0x226   :  { %2755 = vmatpush3.bf16.xpose.msra.mxu0 %v3862_v50 }
 0x227   :  { %2756 = vmatprep.subr.bf16.mxu0 %v3462_v0 }
 0x228   :  { %2775 = vmatpush3.bf16.xpose.msra.mxu1 %v3864_v51 }
 0x229   :  { %2776 = vmatprep.subr.bf16.mxu1 %v3462_v0 }
 0x22e   :  { %2757 = vmatpush3.bf16.xpose.msra.mxu0 %v3870_v52 }
 0x22f   :  { %2758 = vmatprep.subr.bf16.mxu0 %v3462_v0 }
 0x230   :  { %2777 = vmatpush3.bf16.xpose.msra.mxu1 %v3872_v53 }
 0x231   :  { %2778 = vmatprep.subr.bf16.mxu1 %v3462_v0 }
 0x236   :  { %2759 = vmatpush3.bf16.xpose.msra.mxu0 %v3878_v8 }
 0x237   :  { %2760 = vmatprep.subr.bf16.mxu0 %v3462_v0 }
 0x238   :  { %2779 = vmatpush3.bf16.xpose.msra.mxu1 %v3880_v9 }
 0x239   :  { %2780 = vmatprep.subr.bf16.mxu1 %v3462_v0 }
 0x23e   :  { %2761 = vmatpush3.bf16.xpose.msra.mxu0 %v3886_v10 }
 0x23f   :  { %2762 = vmatprep.subr.bf16.mxu0 %v3462_v0 }
 0x240   :  { %2781 = vmatpush3.bf16.xpose.msra.mxu1 %v3888_v14 }
 0x241   :  { %2782 = vmatprep.subr.bf16.mxu1 %v3462_v0 }
 0x246   :  { %2763 = vmatpush3.bf16.xpose.msra.mxu0 %v3896_v17 }
 0x247   :  { %2788 = vmatprep.subr.bf16.mxu0 %v3462_v0 }
 0x248   :  { %2783 = vmatpush3.bf16.xpose.msra.mxu1 %v3898_v18 }
 0x249   :  { %2808 = vmatprep.subr.bf16.mxu1 %v3462_v0 }
 0x24d   :  { %2765 = vmatmul.mubr.bf16.vlgmr.msra.gmra.mrb[12].mxu0 %v1214_v38  ;;  %v3944_v38 = vld [vmem:[#allocation7 + $0x1e0] sm:$0xff]  }
 0x24e   :  { %2789 = vmatpush3.bf16.xpose.msra.mxu0 %v3904_v34  ;;  %2804 = vmatprep.mubr.msk.bf16.mxu0 %vm3464_vm0, %v3462_v0  ;;  %4262 = vst [vmem:[#allocation27_spill] sm:$0xff] %v3944_v38 }
 0x24f   :  { %2785 = vmatmul.mubr.bf16.vlgmr.msra.gmra.mrb[16].mxu1 %v1308_v39  ;;  %2790 = vmatprep.subr.bf16.mxu0 %v3462_v0  ;;  %v3950_v39 = vld [vmem:[#allocation7 + $0x1a8] sm:$0xff]  }
 0x250   :  { %2809 = vmatpush3.bf16.xpose.msra.mxu1 %v3907_v16  ;;  %2824 = vmatprep.mubr.msk.bf16.mxu1 %vm3464_vm0, %v3462_v0  ;;  %4263 = vst [vmem:[#allocation28_spill] sm:$0xff] %v3950_v39 }
 0x251   :  { %2810 = vmatprep.subr.bf16.mxu1 %v3462_v0 }
 0x256   :  { %2791 = vmatpush3.bf16.xpose.msra.mxu0 %v3918_v40 }
 0x257   :  { %2792 = vmatprep.subr.bf16.mxu0 %v3462_v0 }
 0x258   :  { %2811 = vmatpush3.bf16.xpose.msra.mxu1 %v3920_v42 }
 0x259   :  { %2812 = vmatprep.subr.bf16.mxu1 %v3462_v0 }
 0x25e   :  { %2793 = vmatpush3.bf16.xpose.msra.mxu0 %v3926_v44 }
 0x25f   :  { %2794 = vmatprep.subr.bf16.mxu0 %v3462_v0 }
 0x260   :  { %2813 = vmatpush3.bf16.xpose.msra.mxu1 %v3928_v7 }
 0x261   :  { %2814 = vmatprep.subr.bf16.mxu1 %v3462_v0 }
 0x266   :  { %2795 = vmatpush3.bf16.xpose.msra.mxu0 %v3934_v20 }
 0x267   :  { %2796 = vmatprep.subr.bf16.mxu0 %v3462_v0 }
 0x268   :  { %2815 = vmatpush3.bf16.xpose.msra.mxu1 %v3936_v49 }
 0x269   :  { %2816 = vmatprep.subr.bf16.mxu1 %v3462_v0 }
 0x26e   :  { %2797 = vmatpush3.bf16.xpose.msra.mxu0 %v3942_v12  ;;  %v3960_v12 = vld [vmem:[#allocation7 + $0x1f0] sm:$0xff]  }
 0x26f   :  { %2798 = vmatprep.subr.bf16.mxu0 %v3462_v0  ;;  %4266 = vst [vmem:[#allocation31_spill] sm:$0xff] %v3960_v12 }
 0x270   :  { %2817 = vmatpush3.bf16.xpose.msra.mxu1 %v3944_v38  ;;  %v3968_v38 = vld [vmem:[#allocation7 + $0x1b8] sm:$0xff]  }
 0x271   :  { %2818 = vmatprep.subr.bf16.mxu1 %v3462_v0 }
 0x276   :  { %2799 = vmatpush3.bf16.xpose.msra.mxu0 %v3950_v39  ;;  %v825_v39 = vcombine.high %v3819_v35, %v3819_v35 }
 0x277   :  { %2800 = vmatprep.subr.bf16.mxu0 %v3462_v0 }
 0x278   :  { %2819 = vmatpush3.bf16.xpose.msra.mxu1 %v3952_v11  ;;  %v3970_v11 = vld [vmem:[#allocation7 + $0x1f8] sm:$0xff]   ;;  %v833_v49 = vunpack.i.h.s16 %v825_v39  ;;  %v2414_v20 = vpack.i.b16 %v825_v39, %v825_v39 }
 0x279   :  { %2820 = vmatprep.subr.bf16.mxu1 %v3462_v0 }
 0x27e   :  { %2801 = vmatpush3.bf16.xpose.msra.mxu0 %v3958_v15  ;;  %v1492_v15 = vpack.i.b16 %v833_v49, %v833_v49 }
 0x27f   :  { %2802 = vmatprep.subr.bf16.mxu0 %v3462_v0 }
 0x280   :  { %2821 = vmatpush3.bf16.xpose.msra.mxu1 %v3960_v12  ;;  %v1402_v12 = vrot.slane %v2414_v20, %v3738_v13  ;;  %v1496_v35 = vrot.slane %v1492_v15, %v3738_v13 }
 0x281   :  { %2822 = vmatprep.subr.bf16.mxu1 %v3462_v0 }
 0x286   :  { %2803 = vmatpush3.bf16.xpose.msra.mxu0 %v3968_v38 }
 0x287   :  { %2828 = vmatprep.subr.bf16.mxu0 %v3462_v0 }
 0x288   :  { %2823 = vmatpush3.bf16.xpose.msra.mxu1 %v3970_v11 }
 0x289   :  { %2848 = vmatprep.subr.bf16.mxu1 %v3462_v0 }
 0x28d   :  { %2805 = vmatmul.mubr.bf16.vlgmr.msra.gmra.mrb[16].mxu0 %v1402_v12 }
 0x28e   :  { %2829 = vmatpush3.bf16.msra.mxu0 %v3673_v54  ;;  %2844 = vmatprep.mubr.msk.bf16.mxu0 %vm3464_vm0, %v3462_v0  ;;  %v4267_v54 = vlaneseq }
 0x28f   :  { %2825 = vmatmul.mubr.bf16.vlgmr.msra.gmra.mrb[20].mxu1 %v1496_v35  ;;  %2830 = vmatprep.subr.bf16.mxu0 %v3462_v0 }
 0x290   :  { %2849 = vmatpush3.bf16.msra.mxu1 %v3675_v55  ;;  %2864 = vmatprep.mubr.msk.bf16.mxu1 %vm3464_vm0, %v3462_v0  ;;  %v3995_v55 = vand.u32 127, %v4267_v54 }
 0x291   :  { %2850 = vmatprep.subr.bf16.mxu1 %v3462_v0 }
 0x292   :  { %2831 = vmatpush3.bf16.msra.mxu0 %v3681_v56  ;;  %vm1588_vm1 = vcmp.lt.s32.totalorder %v3995_v55, 10 }
 0x293   :  { %2832 = vmatprep.subr.bf16.mxu0 %v3462_v0 }
 0x294   :  { %2851 = vmatpush3.bf16.msra.mxu1 %v3684_v57 }
 0x295   :  { %2852 = vmatprep.subr.bf16.mxu1 %v3462_v0 }
 0x296   :  { %2833 = vmatpush3.bf16.msra.mxu0 %v3689_v58 }
 0x297   :  { %2834 = vmatprep.subr.bf16.mxu0 %v3462_v0 }
 0x298   :  { %2853 = vmatpush3.bf16.msra.mxu1 %v3692_v59 }
 0x299   :  { %2854 = vmatprep.subr.bf16.mxu1 %v3462_v0 }
 0x29a   :  { %2835 = vmatpush3.bf16.msra.mxu0 %v3697_v60 }
 0x29b   :  { %2836 = vmatprep.subr.bf16.mxu0 %v3462_v0 }
 0x29c   :  { %2855 = vmatpush3.bf16.msra.mxu1 %v3700_v61 }
 0x29d   :  { %2856 = vmatprep.subr.bf16.mxu1 %v3462_v0 }
 0x29e   :  { %2837 = vmatpush3.bf16.msra.mxu0 %v3705_v62 }
 0x29f   :  { %2838 = vmatprep.subr.bf16.mxu0 %v3462_v0 }
 0x2a0   :  { %v922_v56 = vpop.f32.mrb[4].mxu0  ;;  %2857 = vmatpush3.bf16.msra.mxu1 %v3708_v63 }
 0x2a1   :  { %v1589_v57 = vsel %vm1588_vm1, %v922_v56, -1e+30  ;;  %v2686_v58 = vpop.f32.mrb[5].mxu0  ;;  %2858 = vmatprep.subr.bf16.mxu1 %v3462_v0 }
 0x2a2   :  { %v925_v59 = vpop.f32.mrb[6].mxu0  ;;  %v1016_v60 = vpop.f32.mrb[8].mxu1  ;;  %v1598_v61 = vsel %vm1597_vm2, %v1589_v57, -inf  ;;  %2839 = vmatpush3.bf16.msra.mxu0 %v3713_v1 }
 0x2a3   :  { %v1590_v62 = vsel %vm1588_vm1, %v1016_v60, -1e+30  ;;  %v2706_v13 = vpop.f32.mrb[9].mxu1  ;;  %1599 = vmax.xlane.f32.xlu0 %v1598_v61  ;;  %v2687_v15 = vpop.f32.mrb[7].mxu0  ;;  %2840 = vmatprep.subr.bf16.mxu0 %v3462_v0 }
 0x2a4   :  { %v1019_v63 = vpop.f32.mrb[10].mxu1  ;;  %2859 = vmatpush3.bf16.msra.mxu1 %v3716_v2  ;;  %v1601_v49 = vsel %vm1597_vm2, %v1590_v62, -inf }
 0x2a5   :  { %v2707_v20 = vpop.f32.mrb[11].mxu1  ;;  %2860 = vmatprep.subr.bf16.mxu1 %v3462_v0 }
 0x2a6   :  { %2841 = vmatpush3.bf16.msra.mxu0 %v3721_v3 }
 0x2a7   :  { %1602 = vmax.xlane.f32.xlu0 %v1601_v49  ;;  %2842 = vmatprep.subr.bf16.mxu0 %v3462_v0 }
 0x2a8   :  { %2861 = vmatpush3.bf16.msra.mxu1 %v3724_v4 }
 0x2a9   :  { %2862 = vmatprep.subr.bf16.mxu1 %v3462_v0 }
 0x2aa   :  { %2843 = vmatpush3.bf16.msra.mxu0 %v3729_v5 }
 0x2ab   :  { %2868 = vmatprep.subr.bf16.mxu0 %v3462_v0 }
 0x2ac   :  { %2863 = vmatpush3.bf16.msra.mxu1 %v3731_v6 }
 0x2ad   :  { %2888 = vmatprep.subr.bf16.mxu1 %v3462_v0 }
 0x2e0   :  { %v1110_v1 = vpop.f32.mrb[8].mxu0 }
 0x2e1   :  { %v1591_v2 = vsel %vm1588_vm1, %v1110_v1, -1e+30  ;;  %v2726_v3 = vpop.f32.mrb[9].mxu0 }
 0x2e2   :  { %v1113_v12 = vpop.f32.mrb[10].mxu0  ;;  %v1204_v39 = vpop.f32.mrb[12].mxu1  ;;  %v1604_v35 = vsel %vm1597_vm2, %v1591_v2, -inf }
 0x2e3   :  { %v1592_v4 = vsel %vm1588_vm1, %v1204_v39, -1e+30  ;;  %v2746_v54 = vpop.f32.mrb[13].mxu1  ;;  %1605 = vmax.xlane.f32.xlu1 %v1604_v35  ;;  %v2727_v5 = vpop.f32.mrb[11].mxu0 }
 0x2e4   :  { %v1207_v56 = vpop.f32.mrb[14].mxu1  ;;  %v1607_v6 = vsel %vm1597_vm2, %v1592_v4, -inf }
 0x2e5   :  { %v2747_v58 = vpop.f32.mrb[15].mxu1 }
 0x2e7   :  { %1608 = vmax.xlane.f32.xlu1 %v1607_v6 }
 0x320   :  { %v1298_v59 = vpop.f32.mrb[12].mxu0 }
 0x321   :  { %v1593_v60 = vsel %vm1588_vm1, %v1298_v59, -1e+30  ;;  %v2766_v61 = vpop.f32.mrb[13].mxu0 }
 0x322   :  { %v1301_v13 = vpop.f32.mrb[14].mxu0  ;;  %v1392_v15 = vpop.f32.mrb[16].mxu1  ;;  %v1610_v63 = vsel %vm1597_vm2, %v1593_v60, -inf }
 0x323   :  { %v1594_v20 = vsel %vm1588_vm1, %v1392_v15, -1e+30  ;;  %v2786_v49 = vpop.f32.mrb[17].mxu1  ;;  %1611 = vmax.xlane.f32.xlu0 %v1610_v63  ;;  %v2767_v1 = vpop.f32.mrb[15].mxu0 }
 0x324   :  { %v1395_v3 = vpop.f32.mrb[18].mxu1  ;;  %v1613_v12 = vsel %vm1597_vm2, %v1594_v20, -inf }
 0x325   :  { %v2787_v39 = vpop.f32.mrb[19].mxu1  ;;  %1614 = vmax.xlane.f32.xlu1 %v1613_v12 }
 0x330   :  { %v1600_v35 = vpop.xlane.xlu0 %1599 }
 0x331   :  { %v1622_v54 = vsub.f32 %v1589_v57, %v1600_v35 }
 0x333   :  { %v1630_v5 = vmul.f32 1.442695, %v1622_v54 }
 0x334   :  { %v1603_v56 = vpop.xlane.xlu0 %1602 }
 0x335   :  { %3207 = vpow2.f32 %v1630_v5  ;;  %v1623_v58 = vsub.f32 %v1590_v62, %v1603_v56 }
 0x337   :  { %v1632_v6 = vmul.f32 1.442695, %v1623_v58 }
 0x339   :  { %3209 = vpow2.f32 %v1632_v6 }
 0x33f   :  { %v3208_v59 = vpop.eup %3207 }
 0x340   :  { %v1646_v61 = vsel %vm1597_vm2, %v3208_v59, 0.0 }
 0x341   :  { %1647 = vadd.xlane.f32.xlu0 %v1646_v61 }
 0x343   :  { %v3210_v13 = vpop.eup %3209 }
 0x344   :  { %v1649_v15 = vsel %vm1597_vm2, %v3210_v13, 0.0 }
 0x345   :  { %1650 = vadd.xlane.f32.xlu1 %v1649_v15 }
 0x360   :  { %v1486_v63 = vpop.f32.mrb[16].mxu0 }
 0x361   :  { %v4040_v49 = vsel %vm1588_vm1, %v1486_v63, -1e+30  ;;  %v2806_v57 = vpop.f32.mrb[17].mxu0 }
 0x362   :  { %v1489_v1 = vpop.f32.mrb[18].mxu0  ;;  %v1580_v3 = vpop.f32.mrb[20].mxu1  ;;  %v1616_v62 = vsel %vm1597_vm2, %v4040_v49, -inf }
 0x363   :  { %v4046_v12 = vsel %vm1588_vm1, %v1580_v3, -1e+30  ;;  %v2826_v39 = vpop.f32.mrb[21].mxu1  ;;  %1617 = vmax.xlane.f32.xlu0 %v1616_v62  ;;  %v2807_v35 = vpop.f32.mrb[19].mxu0 }
 0x364   :  { %v1583_v54 = vpop.f32.mrb[22].mxu1  ;;  %v1619_v5 = vsel %vm1597_vm2, %v4046_v12, -inf }
 0x365   :  { %v2827_v56 = vpop.f32.mrb[23].mxu1  ;;  %1620 = vmax.xlane.f32.xlu1 %v1619_v5 }
 0x370   :  { %v1606_v58 = vpop.xlane.xlu1 %1605 }
 0x371   :  { %v1624_v6 = vsub.f32 %v1591_v2, %v1606_v58 }
 0x373   :  { %v1634_v61 = vmul.f32 1.442695, %v1624_v6 }
 0x374   :  { %v1609_v15 = vpop.xlane.xlu1 %1608 }
 0x375   :  { %3211 = vpow2.f32 %v1634_v61  ;;  %v1625_v63 = vsub.f32 %v1592_v4, %v1609_v15 }
 0x377   :  { %v1636_v57 = vmul.f32 1.442695, %v1625_v63 }
 0x379   :  { %3213 = vpow2.f32 %v1636_v57 }
 0x37f   :  { %v4050_v55 = vpop.eup %3211 }
 0x380   :  { %v1652_v1 = vsel %vm1597_vm2, %v4050_v55, 0.0 }
 0x381   :  { %1653 = vadd.xlane.f32.xlu0 %v1652_v1 }
 0x383   :  { %v4054_v3 = vpop.eup %3213 }
 0x384   :  { %v1655_v62 = vsel %vm1597_vm2, %v4054_v3, 0.0 }
 0x385   :  { %1656 = vadd.xlane.f32.xlu1 %v1655_v62 }
 0x3b0   :  { %v1612_v39 = vpop.xlane.xlu0 %1611 }
 0x3b1   :  { %v1626_v2 = vsub.f32 %v1593_v60, %v1612_v39 }
 0x3b2   :  { %v1615_v35 = vpop.xlane.xlu1 %1614 }
 0x3b3   :  { %v1638_v54 = vmul.f32 1.442695, %v1626_v2  ;;  %v1627_v5 = vsub.f32 %v1594_v20, %v1615_v35  ;;  %v3185_v2 = vld [vmem:[#allocation11 + $0x20] sm:$0xff]  }
 0x3b5   :  { %3215 = vpow2.f32 %v1638_v54  ;;  %v1640_v4 = vmul.f32 1.442695, %v1627_v5  ;;  %v3186_v54 = vld [vmem:[#allocation11 + $0x28] sm:$0xff]  }
 0x3b7   :  { %3217 = vpow2.f32 %v1640_v4 }
 0x3bf   :  { %v4058_v56 = vpop.eup %3215 }
 0x3c0   :  { %v1658_v58 = vsel %vm1597_vm2, %v4058_v56, 0.0 }
 0x3c1   :  { %v4062_v6 = vpop.eup %3217  ;;  %1659 = vadd.xlane.f32.xlu0 %v1658_v58 }
 0x3c2   :  { %v1661_v61 = vsel %vm1597_vm2, %v4062_v6, 0.0 }
 0x3c3   :  { %1662 = vadd.xlane.f32.xlu1 %v1661_v61 }
 0x3ce   :  { %v1648_v15 = vpop.xlane.xlu0 %1647 }
 0x3cf   :  { %3219 = vrcp.f32 %v1648_v15 }
 0x3d2   :  { %v1651_v60 = vpop.xlane.xlu1 %1650 }
 0x3d3   :  { %3221 = vrcp.f32 %v1651_v60 }
 0x3d9   :  { %v3220_v20 = vpop.eup %3219 }
 0x3da   :  { %v1678_v63 = vmul.f32 %v3220_v20, %v3208_v59 }
 0x3dc   :  { %v1686_v57 = vpack.c.bf16 %v1678_v63, %v1678_v63 }
 0x3dd   :  { %v3222_v1 = vpop.eup %3221 }
 0x3de   :  { %2845 = vmatmul.mubr.bf16.vlgmr.msra.gmra.mrb[20].mxu0 %v1686_v57  ;;  %v1679_v62 = vmul.f32 %v3222_v1, %v3210_v13  ;;  %v3188_v1 = vld [vmem:[#allocation11 + $0x38] sm:$0xff]  }
 0x3df   :  { %2869 = vmatpush3.bf16.msra.mxu0 %v3757_v19  ;;  %2884 = vmatprep.mubr.msk.bf16.mxu0 %vm3464_vm0, %v3462_v0 }
 0x3e0   :  { %v1687_v39 = vpack.c.bf16 %v1679_v62, %v1679_v62  ;;  %2870 = vmatprep.subr.bf16.mxu0 %v3462_v0 }
 0x3e2   :  { %2865 = vmatmul.mubr.bf16.vlgmr.msra.gmra.mrb[24].mxu1 %v1687_v39 }
 0x3e3   :  { %2889 = vmatpush3.bf16.msra.mxu1 %v3760_v21  ;;  %2871 = vmatpush3.bf16.msra.mxu0 %v3771_v22 }
 0x3e4   :  { %2872 = vmatprep.subr.bf16.mxu0 %v3462_v0  ;;  %2890 = vmatprep.subr.bf16.mxu1 %v3462_v0 }
 0x3e5   :  { %2904 = vmatprep.mubr.msk.bf16.mxu1 %vm3464_vm0, %v3462_v0 }
 0x3e7   :  { %2873 = vmatpush3.bf16.msra.mxu0 %v3779_v24  ;;  %2891 = vmatpush3.bf16.msra.mxu1 %v3773_v23 }
 0x3e8   :  { %2874 = vmatprep.subr.bf16.mxu0 %v3462_v0  ;;  %2892 = vmatprep.subr.bf16.mxu1 %v3462_v0 }
 0x3eb   :  { %2875 = vmatpush3.bf16.msra.mxu0 %v3787_v26  ;;  %2893 = vmatpush3.bf16.msra.mxu1 %v3781_v25 }
 0x3ec   :  { %2876 = vmatprep.subr.bf16.mxu0 %v3462_v0  ;;  %2894 = vmatprep.subr.bf16.mxu1 %v3462_v0 }
 0x3ef   :  { %2877 = vmatpush3.bf16.msra.mxu0 %v3795_v28  ;;  %2895 = vmatpush3.bf16.msra.mxu1 %v3789_v27 }
 0x3f0   :  { %v1618_v19 = vpop.xlane.xlu0 %1617  ;;  %2896 = vmatprep.subr.bf16.mxu1 %v3462_v0  ;;  %2878 = vmatprep.subr.bf16.mxu0 %v3462_v0 }
 0x3f1   :  { %v1628_v21 = vsub.f32 %v4040_v49, %v1618_v19  ;;  %v3189_v19 = vld [vmem:[#allocation13] sm:$0xff]  }
 0x3f2   :  { %v1621_v22 = vpop.xlane.xlu1 %1620 }
 0x3f3   :  { %v1642_v23 = vmul.f32 1.442695, %v1628_v21  ;;  %v1629_v24 = vsub.f32 %v4046_v12, %v1621_v22  ;;  %2879 = vmatpush3.bf16.msra.mxu0 %v3803_v30  ;;  %2897 = vmatpush3.bf16.msra.mxu1 %v3797_v29  ;;  %v3181_v12 = vld [vmem:[#allocation11] sm:$0xff]   ;;  %v3190_v22 = vld [vmem:[#allocation13 + $0x8] sm:$0xff]  }
 0x3f4   :  { %2880 = vmatprep.subr.bf16.mxu0 %v3462_v0  ;;  %2898 = vmatprep.subr.bf16.mxu1 %v3462_v0 }
 0x3f5   :  { %3223 = vpow2.f32 %v1642_v23  ;;  %v1644_v25 = vmul.f32 1.442695, %v1629_v24  ;;  %v4276_v23 = vld [vmem:[#allocation23_spill] sm:$0xff] }
 0x3f6   :  { %v3191_v24 = vld [vmem:[#allocation13 + $0x10] sm:$0xff]  }
 0x3f7   :  { %3225 = vpow2.f32 %v1644_v25  ;;  %2881 = vmatpush3.bf16.msra.mxu0 %v3811_v32  ;;  %2899 = vmatpush3.bf16.msra.mxu1 %v3805_v31  ;;  %v3192_v25 = vld [vmem:[#allocation13 + $0x18] sm:$0xff]  }
 0x3f8   :  { %2882 = vmatprep.subr.bf16.mxu0 %v3462_v0  ;;  %2900 = vmatprep.subr.bf16.mxu1 %v3462_v0 }
 0x3fb   :  { %2883 = vmatpush3.bf16.msra.mxu0 %v3821_v36  ;;  %2901 = vmatpush3.bf16.msra.mxu1 %v3813_v33 }
 0x3fc   :  { %2902 = vmatprep.subr.bf16.mxu1 %v3462_v0  ;;  %2908 = vmatprep.subr.bf16.mxu0 %v3462_v0 }
 0x3ff   :  { %v4102_v26 = vpop.eup %3223  ;;  %2903 = vmatpush3.bf16.msra.mxu1 %v3823_v37 }
 0x400   :  { %v1664_v27 = vsel %vm1597_vm2, %v4102_v26, 0.0  ;;  %2928 = vmatprep.subr.bf16.mxu1 %v3462_v0 }
 0x401   :  { %v4108_v28 = vpop.eup %3225  ;;  %1665 = vadd.xlane.f32.xlu0 %v1664_v27 }
 0x402   :  { %v1667_v29 = vsel %vm1597_vm2, %v4108_v28, 0.0 }
 0x403   :  { %1668 = vadd.xlane.f32.xlu1 %v1667_v29 }
 0x40e   :  { %v1654_v30 = vpop.xlane.xlu0 %1653 }
 0x40f   :  { %3227 = vrcp.f32 %v1654_v30 }
 0x412   :  { %v1657_v31 = vpop.xlane.xlu1 %1656 }
 0x413   :  { %3229 = vrcp.f32 %v1657_v31 }
 0x419   :  { %v3228_v32 = vpop.eup %3227 }
 0x41a   :  { %v1680_v33 = vmul.f32 %v3228_v32, %v4050_v55  ;;  %v3183_v55 = vld [vmem:[#allocation11 + $0x10] sm:$0xff]  }
 0x41c   :  { %v1688_v36 = vpack.c.bf16 %v1680_v33, %v1680_v33 }
 0x41d   :  { %v3230_v37 = vpop.eup %3229 }
 0x41e   :  { %2885 = vmatmul.mubr.bf16.vlgmr.msra.gmra.mrb[24].mxu0 %v1688_v36  ;;  %v1681_v59 = vmul.f32 %v3230_v37, %v4054_v3  ;;  %v3184_v3 = vld [vmem:[#allocation11 + $0x18] sm:$0xff]   ;;  %v3195_v37 = vld [vmem:[#allocation13 + $0x30] sm:$0xff]  }
 0x41f   :  { %2909 = vmatpush3.bf16.msra.mxu0 %v3832_v41  ;;  %2924 = vmatprep.mubr.msk.bf16.mxu0 %vm3464_vm0, %v3462_v0 }
 0x420   :  { %v1689_v13 = vpack.c.bf16 %v1681_v59, %v1681_v59  ;;  %2910 = vmatprep.subr.bf16.mxu0 %v3462_v0 }
 0x422   :  { %2905 = vmatmul.mubr.bf16.vlgmr.msra.gmra.mrb[28].mxu1 %v1689_v13 }
 0x423   :  { %2929 = vmatpush3.bf16.msra.mxu1 %v3835_v43  ;;  %2911 = vmatpush3.bf16.msra.mxu0 %v3846_v45 }
 0x424   :  { %2930 = vmatprep.subr.bf16.mxu1 %v3462_v0  ;;  %2912 = vmatprep.subr.bf16.mxu0 %v3462_v0 }
 0x425   :  { %2944 = vmatprep.mubr.msk.bf16.mxu1 %vm3464_vm0, %v3462_v0 }
 0x427   :  { %2931 = vmatpush3.bf16.msra.mxu1 %v3848_v46  ;;  %2913 = vmatpush3.bf16.msra.mxu0 %v3854_v47 }
 0x428   :  { %2932 = vmatprep.subr.bf16.mxu1 %v3462_v0  ;;  %2914 = vmatprep.subr.bf16.mxu0 %v3462_v0 }
 0x42b   :  { %2933 = vmatpush3.bf16.msra.mxu1 %v3856_v48  ;;  %2915 = vmatpush3.bf16.msra.mxu0 %v3862_v50 }
 0x42c   :  { %2934 = vmatprep.subr.bf16.mxu1 %v3462_v0  ;;  %2916 = vmatprep.subr.bf16.mxu0 %v3462_v0 }
 0x42f   :  { %2935 = vmatpush3.bf16.msra.mxu1 %v3864_v51  ;;  %2917 = vmatpush3.bf16.msra.mxu0 %v3870_v52  ;;  %v4268_v52 = vld [vmem:[#allocation24_spill] sm:$0xff] }
 0x430   :  { %2936 = vmatprep.subr.bf16.mxu1 %v3462_v0  ;;  %2918 = vmatprep.subr.bf16.mxu0 %v3462_v0 }
 0x433   :  { %2937 = vmatpush3.bf16.msra.mxu1 %v3872_v53  ;;  %2919 = vmatpush3.bf16.msra.mxu0 %v3878_v8  ;;  %v4269_v53 = vld [vmem:[#allocation25_spill] sm:$0xff]  ;;  %v4270_v8 = vld [vmem:[#allocation26_spill] sm:$0xff] }
 0x434   :  { %2938 = vmatprep.subr.bf16.mxu1 %v3462_v0  ;;  %2920 = vmatprep.subr.bf16.mxu0 %v3462_v0 }
 0x437   :  { %2939 = vmatpush3.bf16.msra.mxu1 %v3880_v9  ;;  %2921 = vmatpush3.bf16.msra.mxu0 %v3886_v10  ;;  %v4271_v9 = vld [vmem:[#allocation27_spill] sm:$0xff]  ;;  %v4272_v10 = vld [vmem:[#allocation28_spill] sm:$0xff] }
 0x438   :  { %2940 = vmatprep.subr.bf16.mxu1 %v3462_v0  ;;  %2922 = vmatprep.subr.bf16.mxu0 %v3462_v0 }
 0x43b   :  { %2941 = vmatpush3.bf16.msra.mxu1 %v3888_v14  ;;  %2923 = vmatpush3.bf16.msra.mxu0 %v3896_v17  ;;  %v4273_v14 = vld [vmem:[#allocation29_spill] sm:$0xff]  ;;  %v4274_v17 = vld [vmem:[#allocation30_spill] sm:$0xff] }
 0x43c   :  { %2942 = vmatprep.subr.bf16.mxu1 %v3462_v0  ;;  %2948 = vmatprep.subr.bf16.mxu0 %v3462_v0 }
 0x43f   :  { %2943 = vmatpush3.bf16.msra.mxu1 %v3898_v18  ;;  %v4275_v18 = vld [vmem:[#allocation31_spill] sm:$0xff] }
 0x440   :  { %2968 = vmatprep.subr.bf16.mxu1 %v3462_v0 }
 0x44e   :  { %v1660_v41 = vpop.xlane.xlu0 %1659 }
 0x44f   :  { %3231 = vrcp.f32 %v1660_v41 }
 0x450   :  { %v1663_v43 = vpop.xlane.xlu1 %1662 }
 0x451   :  { %3233 = vrcp.f32 %v1663_v43 }
 0x459   :  { %v3232_v45 = vpop.eup %3231 }
 0x45a   :  { %v1682_v46 = vmul.f32 %v3232_v45, %v4058_v56 }
 0x45b   :  { %v3234_v47 = vpop.eup %3233 }
 0x45c   :  { %v1690_v48 = vpack.c.bf16 %v1682_v46, %v1682_v46  ;;  %v1683_v50 = vmul.f32 %v3234_v47, %v4062_v6  ;;  %v3187_v6 = vld [vmem:[#allocation11 + $0x30] sm:$0xff]  }
 0x45e   :  { %2925 = vmatmul.mubr.bf16.vlgmr.msra.gmra.mrb[28].mxu0 %v1690_v48  ;;  %v1691_v51 = vpack.c.bf16 %v1683_v50, %v1683_v50  ;;  %v3196_v48 = vld [vmem:[#allocation13 + $0x38] sm:$0xff]  }
 0x45f   :  { %2949 = vmatpush3.bf16.msra.mxu0 %v3904_v34  ;;  %2964 = vmatprep.mubr.msk.bf16.mxu0 %vm3464_vm0, %v3462_v0 }
 0x460   :  { %2945 = vmatmul.mubr.bf16.vlgmr.msra.gmra.mrb[32].mxu1 %v1691_v51  ;;  %2950 = vmatprep.subr.bf16.mxu0 %v3462_v0 }
 0x461   :  { %2969 = vmatpush3.bf16.msra.mxu1 %v3907_v16  ;;  %2984 = vmatprep.mubr.msk.bf16.mxu1 %vm3464_vm0, %v3462_v0 }
 0x462   :  { %2970 = vmatprep.subr.bf16.mxu1 %v3462_v0 }
 0x463   :  { %2951 = vmatpush3.bf16.msra.mxu0 %v3918_v40 }
 0x464   :  { %2952 = vmatprep.subr.bf16.mxu0 %v3462_v0 }
 0x465   :  { %2971 = vmatpush3.bf16.msra.mxu1 %v3920_v42 }
 0x466   :  { %2972 = vmatprep.subr.bf16.mxu1 %v3462_v0 }
 0x467   :  { %2953 = vmatpush3.bf16.msra.mxu0 %v3926_v44 }
 0x468   :  { %2954 = vmatprep.subr.bf16.mxu0 %v3462_v0 }
 0x469   :  { %2973 = vmatpush3.bf16.msra.mxu1 %v3928_v7 }
 0x46a   :  { %2974 = vmatprep.subr.bf16.mxu1 %v3462_v0 }
 0x46b   :  { %2955 = vmatpush3.bf16.msra.mxu0 %v4268_v52 }
 0x46c   :  { %2956 = vmatprep.subr.bf16.mxu0 %v3462_v0 }
 0x46d   :  { %2975 = vmatpush3.bf16.msra.mxu1 %v4269_v53 }
 0x46e   :  { %2976 = vmatprep.subr.bf16.mxu1 %v3462_v0 }
 0x46f   :  { %2957 = vmatpush3.bf16.msra.mxu0 %v4270_v8 }
 0x470   :  { %2958 = vmatprep.subr.bf16.mxu0 %v3462_v0 }
 0x471   :  { %2977 = vmatpush3.bf16.msra.mxu1 %v4271_v9 }
 0x472   :  { %2978 = vmatprep.subr.bf16.mxu1 %v3462_v0 }
 0x473   :  { %2959 = vmatpush3.bf16.msra.mxu0 %v4272_v10 }
 0x474   :  { %2960 = vmatprep.subr.bf16.mxu0 %v3462_v0 }
 0x475   :  { %2979 = vmatpush3.bf16.msra.mxu1 %v4273_v14 }
 0x476   :  { %2980 = vmatprep.subr.bf16.mxu1 %v3462_v0 }
 0x477   :  { %2961 = vmatpush3.bf16.msra.mxu0 %v4274_v17 }
 0x478   :  { %2962 = vmatprep.subr.bf16.mxu0 %v3462_v0 }
 0x479   :  { %2981 = vmatpush3.bf16.msra.mxu1 %v4275_v18 }
 0x47a   :  { %2982 = vmatprep.subr.bf16.mxu1 %v3462_v0 }
 0x47b   :  { %2963 = vmatpush3.bf16.msra.mxu0 %v3968_v38 }
 0x47c   :  { %2988 = vmatprep.subr.bf16.mxu0 %v3462_v0 }
 0x47d   :  { %2983 = vmatpush3.bf16.msra.mxu1 %v3970_v11  ;;  %v3182_v11 = vld [vmem:[#allocation11 + $0x8] sm:$0xff]  }
 0x47e   :  { %3008 = vmatprep.subr.bf16.mxu1 %v3462_v0 }
 0x48e   :  { %v1666_v34 = vpop.xlane.xlu0 %1665 }
 0x48f   :  { %3235 = vrcp.f32 %v1666_v34 }
 0x490   :  { %v1669_v16 = vpop.xlane.xlu1 %1668 }
 0x491   :  { %3237 = vrcp.f32 %v1669_v16 }
 0x499   :  { %v3236_v40 = vpop.eup %3235 }
 0x49a   :  { %v1684_v42 = vmul.f32 %v3236_v40, %v4102_v26  ;;  %v3193_v26 = vld [vmem:[#allocation13 + $0x20] sm:$0xff]  }
 0x49b   :  { %v3238_v44 = vpop.eup %3237 }
 0x49c   :  { %v1692_v7 = vpack.c.bf16 %v1684_v42, %v1684_v42  ;;  %v1685_v49 = vmul.f32 %v3238_v44, %v4108_v28  ;;  %v3194_v28 = vld [vmem:[#allocation13 + $0x28] sm:$0xff]  }
 0x49e   :  { %2965 = vmatmul.mubr.bf16.vlgmr.msra.gmra.mrb[32].mxu0 %v1692_v7  ;;  %v1693_v38 = vpack.c.bf16 %v1685_v49, %v1685_v49 }
 0x49f   :  { %3004 = vmatprep.mubr.msk.bf16.mxu0 %vm3464_vm0, %v3462_v0  ;;  %2989 = vmatpush3.bf16.msra.mxu0 %v3189_v19 }
 0x4a0   :  { %2985 = vmatmul.mubr.bf16.vlgmr.msra.gmra.mrb[36].mxu1 %v1693_v38  ;;  %2990 = vmatprep.subr.bf16.mxu0 %v3462_v0 }
 0x4a1   :  { %3009 = vmatpush3.bf16.msra.mxu1 %v3181_v12  ;;  %3024 = vmatprep.mubr.msk.bf16.mxu1 %vm3464_vm0, %v3462_v0 }
 0x4a2   :  { %3010 = vmatprep.subr.bf16.mxu1 %v3462_v0 }
 0x4a3   :  { %2991 = vmatpush3.bf16.msra.mxu0 %v3190_v22 }
 0x4a4   :  { %2992 = vmatprep.subr.bf16.mxu0 %v3462_v0 }
 0x4a5   :  { %3011 = vmatpush3.bf16.msra.mxu1 %v3182_v11 }
 0x4a6   :  { %3012 = vmatprep.subr.bf16.mxu1 %v3462_v0 }
 0x4a7   :  { %2993 = vmatpush3.bf16.msra.mxu0 %v3191_v24 }
 0x4a8   :  { %2994 = vmatprep.subr.bf16.mxu0 %v3462_v0 }
 0x4a9   :  { %3013 = vmatpush3.bf16.msra.mxu1 %v3183_v55 }
 0x4aa   :  { %3014 = vmatprep.subr.bf16.mxu1 %v3462_v0 }
 0x4ab   :  { %2995 = vmatpush3.bf16.msra.mxu0 %v3192_v25 }
 0x4ac   :  { %2996 = vmatprep.subr.bf16.mxu0 %v3462_v0 }
 0x4ad   :  { %3015 = vmatpush3.bf16.msra.mxu1 %v3184_v3 }
 0x4ae   :  { %3016 = vmatprep.subr.bf16.mxu1 %v3462_v0 }
 0x4af   :  { %2997 = vmatpush3.bf16.msra.mxu0 %v3193_v26 }
 0x4b0   :  { %2998 = vmatprep.subr.bf16.mxu0 %v3462_v0 }
 0x4b1   :  { %3017 = vmatpush3.bf16.msra.mxu1 %v3185_v2  ;;  %v1728_v35 = vpop.f32.mrb[20].mxu0 }
 0x4b2   :  { %v2846_v5 = vpop.f32.mrb[21].mxu0  ;;  %3018 = vmatprep.subr.bf16.mxu1 %v3462_v0  ;;  %v2030_v61 = vpack.c.bf16 %v1728_v35, %v1728_v35 }
 0x4b3   :  { %v1731_v4 = vpop.f32.mrb[22].mxu0  ;;  %2999 = vmatpush3.bf16.msra.mxu0 %v3194_v28 }
 0x4b4   :  { %v2847_v56 = vpop.f32.mrb[23].mxu0  ;;  %v2062_v62 = vunpack.c.l.b16 %v2030_v61  ;;  %3000 = vmatprep.subr.bf16.mxu0 %v3462_v0 }
 0x4b5   :  { %3019 = vmatpush3.bf16.msra.mxu1 %v3186_v54  ;;  %v1768_v58 = vpop.f32.mrb[24].mxu1 }
 0x4b6   :  { %v2031_v15 = vpack.c.bf16 %v1768_v58, %v1768_v58  ;;  %v2866_v60 = vpop.f32.mrb[25].mxu1  ;;  %3020 = vmatprep.subr.bf16.mxu1 %v3462_v0 }
 0x4b7   :  { %v1771_v20 = vpop.f32.mrb[26].mxu1  ;;  %3001 = vmatpush3.bf16.msra.mxu0 %v3195_v37 }
 0x4b8   :  { %v2063_v63 = vunpack.c.l.b16 %v2031_v15  ;;  %v2867_v57 = vpop.f32.mrb[27].mxu1  ;;  %3002 = vmatprep.subr.bf16.mxu0 %v3462_v0 }
 0x4b9   :  { %3021 = vmatpush3.bf16.msra.mxu1 %v3187_v6 }
 0x4ba   :  { %v2070_v39 = vrot.slane %v2063_v63, 7  ;;  %3022 = vmatprep.subr.bf16.mxu1 %v3462_v0 }
 0x4bb   :  { %3003 = vmatpush3.bf16.msra.mxu0 %v3196_v48 }
 0x4bc   :  { %v2072_v21 = vsel %vm2071_vm3, %v2070_v39, %v2062_v62 }
 0x4bd   :  { %3023 = vmatpush3.bf16.msra.mxu1 %v3188_v1 }
 0x4c0   :  { %3025 = vmatmul.mubr.bf16.vlgmr.msra.gmra.mrb[40].mxu1 %v4276_v23 }
 0x4f1   :  { %v1808_v27 = vpop.f32.mrb[24].mxu0 }
 0x4f2   :  { %v2032_v29 = vpack.c.bf16 %v1808_v27, %v1808_v27  ;;  %v2886_v30 = vpop.f32.mrb[25].mxu0 }
 0x4f3   :  { %v1811_v31 = vpop.f32.mrb[26].mxu0 }
 0x4f4   :  { %v2064_v32 = vunpack.c.l.b16 %v2032_v29  ;;  %v2887_v33 = vpop.f32.mrb[27].mxu0 }
 0x4f5   :  { %v1848_v36 = vpop.f32.mrb[28].mxu1 }
 0x4f6   :  { %v2073_v59 = vrot.slane %v2064_v32, 6  ;;  %v2033_v13 = vpack.c.bf16 %v1848_v36, %v1848_v36  ;;  %v2906_v41 = vpop.f32.mrb[29].mxu1 }
 0x4f7   :  { %v1851_v43 = vpop.f32.mrb[30].mxu1 }
 0x4f8   :  { %v2075_v45 = vsel %vm2074_vm4, %v2073_v59, %v2072_v21  ;;  %v2065_v46 = vunpack.c.l.b16 %v2033_v13  ;;  %v2907_v47 = vpop.f32.mrb[31].mxu1 }
 0x4fa   :  { %v2076_v50 = vrot.slane %v2065_v46, 5 }
 0x4fc   :  { %v2078_v51 = vsel %vm2077_vm5, %v2076_v50, %v2075_v45 }
 0x531   :  { %v1888_v52 = vpop.f32.mrb[28].mxu0 }
 0x532   :  { %v2034_v53 = vpack.c.bf16 %v1888_v52, %v1888_v52  ;;  %v2926_v8 = vpop.f32.mrb[29].mxu0 }
 0x533   :  { %v1891_v9 = vpop.f32.mrb[30].mxu0  ;;  %v1928_v10 = vpop.f32.mrb[32].mxu1 }
 0x534   :  { %v2066_v14 = vunpack.c.l.b16 %v2034_v53  ;;  %v2035_v17 = vpack.c.bf16 %v1928_v10, %v1928_v10  ;;  %v2927_v18 = vpop.f32.mrb[31].mxu0  ;;  %v2946_v34 = vpop.f32.mrb[33].mxu1 }
 0x535   :  { %v1931_v16 = vpop.f32.mrb[34].mxu1 }
 0x536   :  { %v2079_v40 = vrot.slane %v2066_v14, 4  ;;  %v2067_v42 = vunpack.c.l.b16 %v2035_v17  ;;  %v2947_v44 = vpop.f32.mrb[35].mxu1 }
 0x538   :  { %v2081_v0 = vsel %vm2080_vm6, %v2079_v40, %v2078_v51  ;;  %v2082_v7 = vrot.slane %v2067_v42, 3 }
 0x53a   :  { %v2084_v49 = vsel %vm2083_vm7, %v2082_v7, %v2081_v0 }
 0x571   :  { %v1968_v12 = vpop.f32.mrb[32].mxu0 }
 0x572   :  { %v2036_v38 = vpack.c.bf16 %v1968_v12, %v1968_v12  ;;  %v2966_v11 = vpop.f32.mrb[33].mxu0 }
 0x573   :  { %v1971_v55 = vpop.f32.mrb[34].mxu0  ;;  %v2008_v3 = vpop.f32.mrb[36].mxu1 }
 0x574   :  { %v2068_v2 = vunpack.c.l.b16 %v2036_v38  ;;  %v2037_v35 = vpack.c.bf16 %v2008_v3, %v2008_v3  ;;  %v2967_v54 = vpop.f32.mrb[35].mxu0  ;;  %v2986_v5 = vpop.f32.mrb[37].mxu1 }
 0x575   :  { %v2011_v4 = vpop.f32.mrb[38].mxu1 }
 0x576   :  { %v2085_v56 = vrot.slane %v2068_v2, 2  ;;  %v2069_v58 = vunpack.c.l.b16 %v2037_v35  ;;  %v2987_v6 = vpop.f32.mrb[39].mxu1 }
 0x578   :  { %v2087_v61 = vsel %vm2086_vm8, %v2085_v56, %v2084_v49  ;;  %v2088_v15 = vrot.slane %v2069_v58, 1 }
 0x57a   :  { %v2090_v60 = vsel %vm2089_vm9, %v2088_v15, %v2087_v61 }
 0x57b   :  { %v2091_v20 = vpack.c.b16 %v2090_v60, %v2090_v60 }
 0x57d   :  { %3005 = vmatmul.mubr.bf16.vlgmr.msra.gmra.mrb[36].mxu0 %v2091_v20 }
 0x593   :  { %v2263_v63 = vpop.f32.mrb[40].mxu1 }
 0x594   :  { %v3026_v57 = vpop.f32.mrb[41].mxu1 }
 0x595   :  { %v2266_v1 = vpop.f32.mrb[42].mxu1 }
 0x596   :  { %v3027_v62 = vpop.f32.mrb[43].mxu1 }
 0x597   :  { %3406 = shalt.err (!%p3403_p4)
}
 0x598   :  { %s3407_s7 = scalar_lea.hbm %s4246_s10, 128 }
 0x599   :  { %p3408_p5 = scmp.ne.s32.totalorder %s4246_s10, %s3407_s7  ;;  %p3411_p6 = scmp.lt.u32.totalorder %s3407_s7, %s4246_s10 }
 0x59b   :  { %p3413_p7 = pnand %p3411_p6, %p3408_p5 }
 0x59d   :  { %3416 = shalt.err (!%p3413_p7)
}
 0x59e   :  { %2290 = dma.vmem_to_hbm [thread:$0]  %s2288_s6, 128, %s4246_s10, [#allocation4]   ;;  %v2447_v19 = vld [vmem:[%s4245_s9] ss:$0 sm:$0xff] }
 0x59f   :  { %s3467_s21 = smov [#allocation15]  }
 0x5a0   :  { %s2297_s22 = sshll.u32 %s3467_s21, 4  ;;  %s2298_s22 = int_to_ptr.vmem [resolvable:$true] %s2297_s22 }
 0x5a1   :  { %s3417_s23 = scalar_lea.vmem %s2298_s22, 64  ;;  %p3422_p9 = scmp.lt.s32.totalorder %s2298_s22, %s2298_s22 }
 0x5a2   :  { %p3418_p8 = scmp.ne.s32.totalorder %s2298_s22, %s3417_s23  ;;  %p3423_p10 = scmp.lt.s32.totalorder %s3417_s23, %s3417_s23 }
 0x5a4   :  { %p3424_p11 = por %p3423_p10, %p3422_p9 }
 0x5a6   :  { %p3425_p12 = pnand %p3424_p11, %p3418_p8 }
 0x650   :  { %v2175_v39 = vpop.f32.mrb[36].mxu0 }
 0x651   :  { %v2264_v21 = vadd.f32 %v2263_v63, %v2175_v39  ;;  %v3006_v22 = vpop.f32.mrb[37].mxu0 }
 0x652   :  { %v2178_v23 = vpop.f32.mrb[38].mxu0 }
 0x653   :  { %v2276_v24 = vadd.f32 %v2447_v19, %v2264_v21  ;;  %v3007_v25 = vpop.f32.mrb[39].mxu0 }
 0x655   :  { %3239 = vtanh.f32 %v2276_v24 }
 0x65f   :  { %v3240_v26 = vpop.eup %3239 }
 0x660   :  { %v2279_v27 = vpack.c.bf16 %v3240_v26, %v3240_v26 }
 0x662   :  { %2280 = vst [vmem:[#allocation15] sm:$0xf] %v2279_v27 }
 0x663   :  { %3428 = shalt.err (!%p3425_p12)
}
 0x664   :  { %s3429_s24 = scalar_lea.hbm %s4247_s11, 64 }
 0x665   :  { %p3430_p13 = scmp.ne.s32.totalorder %s4247_s11, %s3429_s24  ;;  %p3433_p0 = scmp.lt.u32.totalorder %s3429_s24, %s4247_s11 }
 0x667   :  { %p3435_p1 = pnand %p3433_p0, %p3430_p13 }
 0x669   :  { %3438 = shalt.err (!%p3435_p1)
}
 0x66a   :  { %2300 = dma.vmem_to_hbm [thread:$0]  %s2298_s22, 64, %s4247_s11, [#allocation16]  }
 0x66b   :  { %3447 = dma.done.wait [#allocation4], 128  }
 0x66c   :  { %3448 = vsyncadd [#allocation4], 4294967168 }
 0x66d   :  { %3449 = dma.done.wait [#allocation16], 64  }
 0x66e   :  { %3450 = vsyncadd [#allocation16], 4294967232 }
 0x66f   :  { %2307 = vsyncpa [#allocation3], 1 }
 0x670   :  { %2308 = vsyncpa [#allocation6], 1 }
 0x671   :  { %2309 = vsyncpa [#allocation9], 1 }
 0x672   :  { %2310 = vsyncpa [#allocation12], 1 }
 0x673   :  { %2311 = vsyncpa [#allocation4], 1 }
 0x674   :  { %2312 = vsyncpa [#allocation16], 1 }

</bundles_post_ra>
